<compile_context>
chip_gen: v5e
topology: v5e:2x2
jax: 0.10.0
libtpu: 0.0.40
codegen_flags: <defaults>
</compile_context>

<pallas_src>
import jax
import jax.numpy as jnp
from jax import lax
from jax.experimental import pallas as pl
from jax.experimental.pallas import tpu as pltpu


def _round_up(x, m):
    return (x + m - 1) // m * m


def _largest_divisor_leq(n, cap):
    cap = max(1, min(n, cap))
    for d in range(cap, 0, -1):
        if n % d == 0:
            return d
    return 1


def svdd_forward(x_ids, emb_table, w_ih, w_hh, h0, c0, *,
                 time_tile=None, batch_block=None):
    """SVDD forward: squeeze(mean_t(LSTM(Embedding(x)))) -> (B, H).

    x_ids: (B, T) int32, emb_table: (V, E), w_ih: (4H, E), w_hh: (4H, H),
    h0/c0: (B, H) float32 (PyTorch gate order i, f, g, o; bias=False).
    """
    B, T = x_ids.shape
    E = emb_table.shape[1]
    H = w_hh.shape[1]

    SUBLANE, LANE = 8, 128
    Bp = _round_up(B, SUBLANE)      # pad batch to f32 sublane multiple
    Hp = _round_up(H, LANE)         # lane-dense gate slices, state and output

    # Batch block (outer "parallel" grid axis; per-core work split on v7x).
    if batch_block is None:
        batch_block = Bp
    Bb = _round_up(batch_block, SUBLANE)
    assert Bp % Bb == 0, (Bp, Bb)
    nb = Bp // Bb

    # Time tile: largest divisor of T whose streamed (Tt, Bb, 4Hp) f32 tile stays
    # within ~2 MiB (amortizes per-grid-step overhead without blowing VMEM).
    row_bytes = Bb * 4 * Hp * 4
    if time_tile is None:
        time_tile = _largest_divisor_leq(T, max(1, (2 * 1024 * 1024) // row_bytes))
    Tt = time_tile
    assert T % Tt == 0, "time_tile must divide T"
    num_t_blocks = T // Tt
    inv_T = 1.0 / float(T)

    # ------------- plain-JAX glue: weight re-layout, pre-projection, gather -------------
    # Pad hidden dim to Hp per gate with zero columns/rows so in-kernel gate slices are
    # 128-lane aligned.  Padded lanes stay exactly zero through the recurrence (no bias)
    # and are sliced off at the end.
    wih_p = jnp.zeros((E, 4 * Hp), jnp.float32)
    whh_p = jnp.zeros((Hp, 4 * Hp), jnp.float32)
    for g in range(4):  # PyTorch gate order: i, f, g, o
        wih_p = wih_p.at[:, g * Hp:g * Hp + H].set(w_ih[g * H:(g + 1) * H, :].T)
        whh_p = whh_p.at[:H, g * Hp:g * Hp + H].set(w_hh[g * H:(g + 1) * H, :].T)

    # Fold the input projection into the gather: (V, 4Hp) table, then token gather.
    proj_table = jnp.dot(emb_table, wih_p, preferred_element_type=jnp.float32)
    x_ids_p = jnp.zeros((Bp, T), jnp.int32).at[:B, :].set(x_ids)   # pad batch with token 0
    xp = jnp.take(proj_table, x_ids_p.T, axis=0)                   # (T, Bp, 4Hp) f32

    h0_p = jnp.zeros((Bp, Hp), jnp.float32).at[:B, :H].set(h0)
    c0_p = jnp.zeros((Bp, Hp), jnp.float32).at[:B, :H].set(c0)

    # Explicit scoped-VMEM budget (streamed tiles double-buffered + resident weights).
    need = (2 * Tt * Bb * 4 * Hp * 4            # streamed pre-projected gate tiles
            + 2 * Hp * 4 * Hp * 4               # resident whh (double-buffered)
            + 2 * 2 * Bb * Hp * 4               # h0, c0
            + 2 * Bb * Hp * 4                   # output block
            + 2 * Bb * Hp * 4)                  # h, c scratch
    vmem_limit = int(min(64 * 1024 * 1024, max(8 * 1024 * 1024, 2 * need)))

    # ---------------------------------- Pallas kernel ----------------------------------
    def kernel(xp_ref, whh_ref, h0_ref, c0_ref, out_ref, h_sc, c_sc):
        t_blk = pl.program_id(1)

        @pl.when(t_blk == 0)
        def _init():
            h_sc[...] = h0_ref[...]
            c_sc[...] = c0_ref[...]
            out_ref[...] = jnp.zeros_like(out_ref)

        whh = whh_ref[...]                      # resident (Hp, 4Hp) f32, hoisted

        def step(s, carry):
            h, c, acc = carry
            # Pre-projected input gates for timestep s plus the serial hidden matmul.
            gates = xp_ref[s] + jnp.dot(h, whh, preferred_element_type=jnp.float32)
            i_g = jax.nn.sigmoid(gates[:, 0 * Hp:1 * Hp])
            f_g = jax.nn.sigmoid(gates[:, 1 * Hp:2 * Hp])
            g_g = jnp.tanh(gates[:, 2 * Hp:3 * Hp])
            o_g = jax.nn.sigmoid(gates[:, 3 * Hp:4 * Hp])
            c_new = f_g * c + i_g * g_g
            h_new = o_g * jnp.tanh(c_new)
            return h_new, c_new, acc + h_new

        h, c, acc = lax.fori_loop(
            0, Tt, step, (h_sc[...], c_sc[...], out_ref[...]),
            unroll=min(Tt, 8))                  # capped unroll bounds vreg pressure
        h_sc[...] = h
        c_sc[...] = c
        out_ref[...] = acc                      # running mean lives in the output block

        @pl.when(t_blk == num_t_blocks - 1)
        def _finalize():
            out_ref[...] = out_ref[...] * inv_T

    out_p = pl.pallas_call(
        kernel,
        out_shape=jax.ShapeDtypeStruct((Bp, Hp), jnp.float32),
        grid_spec=pltpu.PrefetchScalarGridSpec(
            num_scalar_prefetch=0,
            grid=(nb, num_t_blocks),
            in_specs=[
                pl.BlockSpec((Tt, Bb, 4 * Hp), lambda b, t: (t, b, 0)),  # streamed gates
                pl.BlockSpec((Hp, 4 * Hp), lambda b, t: (0, 0)),         # resident whh
                pl.BlockSpec((Bb, Hp), lambda b, t: (b, 0)),             # h0
                pl.BlockSpec((Bb, Hp), lambda b, t: (b, 0)),             # c0
            ],
            out_specs=pl.BlockSpec((Bb, Hp), lambda b, t: (b, 0)),
            scratch_shapes=[pltpu.VMEM((Bb, Hp), jnp.float32)] * 2,      # h, c
        ),
        compiler_params=pltpu.CompilerParams(
            dimension_semantics=("parallel", "arbitrary"),
            vmem_limit_bytes=vmem_limit),
    )(xp, whh_p, h0_p, c0_p)

    # Drop batch/hidden padding; torch.squeeze semantics.
    return jnp.squeeze(out_p[:B, :H])


def reference_forward(x_ids, emb_table, w_ih, w_hh, h0, c0):
    """Pure-JAX f32 reference of the same math."""
    H = w_hh.shape[1]
    embedded = jnp.take(emb_table, x_ids, axis=0)  # (B, T, E)
    wih_t = w_ih.T
    whh_t = w_hh.T

    def step(carry, x_t):
        h, c = carry
        gates = (jnp.dot(x_t, wih_t, preferred_element_type=jnp.float32)
                 + jnp.dot(h, whh_t, preferred_element_type=jnp.float32))
        i_g = jax.nn.sigmoid(gates[:, 0 * H:1 * H])
        f_g = jax.nn.sigmoid(gates[:, 1 * H:2 * H])
        g_g = jnp.tanh(gates[:, 2 * H:3 * H])
        o_g = jax.nn.sigmoid(gates[:, 3 * H:4 * H])
        c_new = f_g * c + i_g * g_g
        h_new = o_g * jnp.tanh(c_new)
        return (h_new, c_new), h_new

    (_, _), hs = lax.scan(step, (h0, c0), jnp.transpose(embedded, (1, 0, 2)))
    return jnp.squeeze(jnp.mean(hs, axis=0))


if __name__ == "__main__":
    # Small deterministic configuration (module defaults: E=8, H=64, 1 layer).
    vocab_size = 16
    embedding_dim = 8
    hidden_dim = 64
    num_layers = 1
    B, T = 2, 8

    key = jax.random.PRNGKey(0)
    k_emb, k_wih, k_whh, k_h0, k_c0, k_x = jax.random.split(key, 6)

    # nn.Embedding(vocab_size, embedding_dim, padding_idx=0): row 0 is zeros.
    emb_table = jax.random.normal(k_emb, (vocab_size, embedding_dim), jnp.float32)
    emb_table = emb_table.at[0].set(0.0)

    # nn.LSTM(bias=False): W_ih (4H, E), W_hh (4H, H), uniform(-1/sqrt(H), 1/sqrt(H)).
    bound = 1.0 / jnp.sqrt(jnp.float32(hidden_dim))
    w_ih = jax.random.uniform(k_wih, (4 * hidden_dim, embedding_dim), jnp.float32,
                              minval=-bound, maxval=bound)
    w_hh = jax.random.uniform(k_whh, (4 * hidden_dim, hidden_dim), jnp.float32,
                              minval=-bound, maxval=bound)

    # torch.randn initial states (deterministic here): (num_layers, B, H) -> layer 0.
    h0 = jax.random.normal(k_h0, (num_layers, B, hidden_dim), jnp.float32)[0]
    c0 = jax.random.normal(k_c0, (num_layers, B, hidden_dim), jnp.float32)[0]

    # Input token ids (B, T).
    x_ids = jax.random.randint(k_x, (B, T), 0, vocab_size, dtype=jnp.int32)

    out = jax.block_until_ready(svdd_forward(x_ids, emb_table, w_ih, w_hh, h0, c0))
    ref = jax.block_until_ready(reference_forward(x_ids, emb_table, w_ih, w_hh, h0, c0))

    assert out.shape == (B, hidden_dim), out.shape
    max_err = float(jnp.max(jnp.abs(out - ref)))
    assert jnp.allclose(out, ref, atol=2e-2, rtol=2e-2), max_err
    print("KERNEL_OK")
</pallas_src>

<mosaic_0001>
module attributes {stable_mosaic.version = 11 : i64} {
  func.func @kernel(%arg0: i32, %arg1: i32, %arg2: memref<8x8x512xf32, #tpu.memory_space<vmem>>, %arg3: memref<128x512xf32, #tpu.memory_space<vmem>>, %arg4: memref<8x128xf32, #tpu.memory_space<vmem>>, %arg5: memref<8x128xf32, #tpu.memory_space<vmem>>, %arg6: memref<8x128xf32, #tpu.memory_space<vmem>>, %arg7: memref<8x128xf32, #tpu.memory_space<vmem>>, %arg8: memref<8x128xf32, #tpu.memory_space<vmem>>) attributes {dimension_semantics = [#tpu.dimension_semantics<parallel>, #tpu.dimension_semantics<arbitrary>], iteration_bounds = array<i64: 1, 1>, scalar_prefetch = 0 : i64, scratch_operands = 2 : i64, tpu.core_type = #tpu.core_type<tc>, window_params = [{transform_indices = @transform_0, window_bounds = array<i64: 8, 8, 512>}, {pipeline_mode = #tpu.pipeline_mode<synchronous>, transform_indices = @transform_1, window_bounds = array<i64: 128, 512>}, {transform_indices = @transform_2, window_bounds = array<i64: 8, 128>}, {transform_indices = @transform_3, window_bounds = array<i64: 8, 128>}, {transform_indices = @transform_4, window_bounds = array<i64: 8, 128>}]} {
    %c0_i32 = arith.constant 0 : i32
    %0 = arith.cmpi eq, %arg1, %c0_i32 : i32
    %1 = arith.extui %0 : i1 to i32
    %c0_i32_0 = arith.constant 0 : i32
    %2 = arith.cmpi ne, %1, %c0_i32_0 : i32
    scf.if %2 {
      %c0_64 = arith.constant 0 : index
      %c0_65 = arith.constant 0 : index
      %261 = vector.load %arg4[%c0_64, %c0_65] : memref<8x128xf32, #tpu.memory_space<vmem>>, vector<8x128xf32>
      %c0_66 = arith.constant 0 : index
      %c0_67 = arith.constant 0 : index
      %262 = vector.load %arg7[%c0_66, %c0_67] : memref<8x128xf32, #tpu.memory_space<vmem>>, vector<8x128xf32>
      tpu.vector_store %arg7[%c0_66, %c0_67], %261 {strides = array<i32>} : memref<8x128xf32, #tpu.memory_space<vmem>>, vector<8x128xf32>,
      %c0_68 = arith.constant 0 : index
      %c0_69 = arith.constant 0 : index
      %263 = vector.load %arg5[%c0_68, %c0_69] : memref<8x128xf32, #tpu.memory_space<vmem>>, vector<8x128xf32>
      %c0_70 = arith.constant 0 : index
      %c0_71 = arith.constant 0 : index
      %264 = vector.load %arg8[%c0_70, %c0_71] : memref<8x128xf32, #tpu.memory_space<vmem>>, vector<8x128xf32>
      tpu.vector_store %arg8[%c0_70, %c0_71], %263 {strides = array<i32>} : memref<8x128xf32, #tpu.memory_space<vmem>>, vector<8x128xf32>,
      %cst_72 = arith.constant 0.000000e+00 : f32
      %265 = vector.broadcast %cst_72 : f32 to vector<8x128xf32>
      %c0_73 = arith.constant 0 : index
      %c0_74 = arith.constant 0 : index
      %266 = vector.load %arg6[%c0_73, %c0_74] : memref<8x128xf32, #tpu.memory_space<vmem>>, vector<8x128xf32>
      tpu.vector_store %arg6[%c0_73, %c0_74], %265 {strides = array<i32>} : memref<8x128xf32, #tpu.memory_space<vmem>>, vector<8x128xf32>,
    } else {
    }
    %c0 = arith.constant 0 : index
    %c0_1 = arith.constant 0 : index
    %3 = vector.load %arg3[%c0, %c0_1] : memref<128x512xf32, #tpu.memory_space<vmem>>, vector<128x512xf32>
    %c0_2 = arith.constant 0 : index
    %c0_3 = arith.constant 0 : index
    %4 = vector.load %arg7[%c0_2, %c0_3] : memref<8x128xf32, #tpu.memory_space<vmem>>, vector<8x128xf32>
    %c0_4 = arith.constant 0 : index
    %c0_5 = arith.constant 0 : index
    %5 = vector.load %arg8[%c0_4, %c0_5] : memref<8x128xf32, #tpu.memory_space<vmem>>, vector<8x128xf32>
    %c0_6 = arith.constant 0 : index
    %c0_7 = arith.constant 0 : index
    %6 = vector.load %arg6[%c0_6, %c0_7] : memref<8x128xf32, #tpu.memory_space<vmem>>, vector<8x128xf32>
    %c0_i32_8 = arith.constant 0 : i32
    %7 = arith.index_cast %c0_i32_8 : i32 to index
    %c0_9 = arith.constant 0 : index
    %c0_10 = arith.constant 0 : index
    %8 = vector.load %arg2[%7, %c0_9, %c0_10] : memref<8x8x512xf32, #tpu.memory_space<vmem>>, vector<1x8x512xf32>
    %9 = vector.shape_cast %8 : vector<1x8x512xf32> to vector<8x512xf32>
    %cst = arith.constant dense<0.000000e+00> : vector<8x512xf32>
    %10 = tpu.matmul %4, %3, %cst {dimension_numbers = #tpu.dot_dimension_numbers<[1], [0], [0], [1], [0, 0, 1, 1], [], []>} : vector<8x128xf32>, vector<128x512xf32>, vector<8x512xf32> -> vector<8x512xf32>
    %11 = arith.addf %9, %10 : vector<8x512xf32>
    %12 = vector.extract_strided_slice %11 {offsets = [0, 0], sizes = [8, 128], strides = [1, 1]} : vector<8x512xf32> to vector<8x128xf32>
    %13 = arith.negf %12 : vector<8x128xf32>
    %14 = math.exp %13 : vector<8x128xf32>
    %cst_11 = arith.constant 1.000000e+00 : f32
    %15 = vector.broadcast %cst_11 : f32 to vector<8x128xf32>
    %16 = arith.addf %15, %14 : vector<8x128xf32>
    %17 = arith.divf %15, %16 : vector<8x128xf32>
    %18 = vector.extract_strided_slice %11 {offsets = [0, 128], sizes = [8, 128], strides = [1, 1]} : vector<8x512xf32> to vector<8x128xf32>
    %19 = arith.negf %18 : vector<8x128xf32>
    %20 = math.exp %19 : vector<8x128xf32>
    %cst_12 = arith.constant 1.000000e+00 : f32
    %21 = vector.broadcast %cst_12 : f32 to vector<8x128xf32>
    %22 = arith.addf %21, %20 : vector<8x128xf32>
    %23 = arith.divf %21, %22 : vector<8x128xf32>
    %24 = vector.extract_strided_slice %11 {offsets = [0, 256], sizes = [8, 128], strides = [1, 1]} : vector<8x512xf32> to vector<8x128xf32>
    %25 = math.tanh %24 : vector<8x128xf32>
    %26 = vector.extract_strided_slice %11 {offsets = [0, 384], sizes = [8, 128], strides = [1, 1]} : vector<8x512xf32> to vector<8x128xf32>
    %27 = arith.negf %26 : vector<8x128xf32>
    %28 = math.exp %27 : vector<8x128xf32>
    %cst_13 = arith.constant 1.000000e+00 : f32
    %29 = vector.broadcast %cst_13 : f32 to vector<8x128xf32>
    %30 = arith.addf %29, %28 : vector<8x128xf32>
    %31 = arith.divf %29, %30 : vector<8x128xf32>
    %32 = arith.mulf %23, %5 : vector<8x128xf32>
    %33 = arith.mulf %17, %25 : vector<8x128xf32>
    %34 = arith.addf %32, %33 : vector<8x128xf32>
    %35 = math.tanh %34 : vector<8x128xf32>
    %36 = arith.mulf %31, %35 : vector<8x128xf32>
    %37 = arith.addf %6, %36 : vector<8x128xf32>
    %c1_i32 = arith.constant 1 : i32
    %38 = arith.index_cast %c1_i32 : i32 to index
    %c0_14 = arith.constant 0 : index
    %c0_15 = arith.constant 0 : index
    %39 = vector.load %arg2[%38, %c0_14, %c0_15] : memref<8x8x512xf32, #tpu.memory_space<vmem>>, vector<1x8x512xf32>
    %40 = vector.shape_cast %39 : vector<1x8x512xf32> to vector<8x512xf32>
    %cst_16 = arith.constant dense<0.000000e+00> : vector<8x512xf32>
    %41 = tpu.matmul %36, %3, %cst_16 {dimension_numbers = #tpu.dot_dimension_numbers<[1], [0], [0], [1], [0, 0, 1, 1], [], []>} : vector<8x128xf32>, vector<128x512xf32>, vector<8x512xf32> -> vector<8x512xf32>
    %42 = arith.addf %40, %41 : vector<8x512xf32>
    %43 = vector.extract_strided_slice %42 {offsets = [0, 0], sizes = [8, 128], strides = [1, 1]} : vector<8x512xf32> to vector<8x128xf32>
    %44 = arith.negf %43 : vector<8x128xf32>
    %45 = math.exp %44 : vector<8x128xf32>
    %cst_17 = arith.constant 1.000000e+00 : f32
    %46 = vector.broadcast %cst_17 : f32 to vector<8x128xf32>
    %47 = arith.addf %46, %45 : vector<8x128xf32>
    %48 = arith.divf %46, %47 : vector<8x128xf32>
    %49 = vector.extract_strided_slice %42 {offsets = [0, 128], sizes = [8, 128], strides = [1, 1]} : vector<8x512xf32> to vector<8x128xf32>
    %50 = arith.negf %49 : vector<8x128xf32>
    %51 = math.exp %50 : vector<8x128xf32>
    %cst_18 = arith.constant 1.000000e+00 : f32
    %52 = vector.broadcast %cst_18 : f32 to vector<8x128xf32>
    %53 = arith.addf %52, %51 : vector<8x128xf32>
    %54 = arith.divf %52, %53 : vector<8x128xf32>
    %55 = vector.extract_strided_slice %42 {offsets = [0, 256], sizes = [8, 128], strides = [1, 1]} : vector<8x512xf32> to vector<8x128xf32>
    %56 = math.tanh %55 : vector<8x128xf32>
    %57 = vector.extract_strided_slice %42 {offsets = [0, 384], sizes = [8, 128], strides = [1, 1]} : vector<8x512xf32> to vector<8x128xf32>
    %58 = arith.negf %57 : vector<8x128xf32>
    %59 = math.exp %58 : vector<8x128xf32>
    %cst_19 = arith.constant 1.000000e+00 : f32
    %60 = vector.broadcast %cst_19 : f32 to vector<8x128xf32>
    %61 = arith.addf %60, %59 : vector<8x128xf32>
    %62 = arith.divf %60, %61 : vector<8x128xf32>
    %63 = arith.mulf %54, %34 : vector<8x128xf32>
    %64 = arith.mulf %48, %56 : vector<8x128xf32>
    %65 = arith.addf %63, %64 : vector<8x128xf32>
    %66 = math.tanh %65 : vector<8x128xf32>
    %67 = arith.mulf %62, %66 : vector<8x128xf32>
    %68 = arith.addf %37, %67 : vector<8x128xf32>
    %c2_i32 = arith.constant 2 : i32
    %69 = arith.index_cast %c2_i32 : i32 to index
    %c0_20 = arith.constant 0 : index
    %c0_21 = arith.constant 0 : index
    %70 = vector.load %arg2[%69, %c0_20, %c0_21] : memref<8x8x512xf32, #tpu.memory_space<vmem>>, vector<1x8x512xf32>
    %71 = vector.shape_cast %70 : vector<1x8x512xf32> to vector<8x512xf32>
    %cst_22 = arith.constant dense<0.000000e+00> : vector<8x512xf32>
    %72 = tpu.matmul %67, %3, %cst_22 {dimension_numbers = #tpu.dot_dimension_numbers<[1], [0], [0], [1], [0, 0, 1, 1], [], []>} : vector<8x128xf32>, vector<128x512xf32>, vector<8x512xf32> -> vector<8x512xf32>
    %73 = arith.addf %71, %72 : vector<8x512xf32>
    %74 = vector.extract_strided_slice %73 {offsets = [0, 0], sizes = [8, 128], strides = [1, 1]} : vector<8x512xf32> to vector<8x128xf32>
    %75 = arith.negf %74 : vector<8x128xf32>
    %76 = math.exp %75 : vector<8x128xf32>
    %cst_23 = arith.constant 1.000000e+00 : f32
    %77 = vector.broadcast %cst_23 : f32 to vector<8x128xf32>
    %78 = arith.addf %77, %76 : vector<8x128xf32>
    %79 = arith.divf %77, %78 : vector<8x128xf32>
    %80 = vector.extract_strided_slice %73 {offsets = [0, 128], sizes = [8, 128], strides = [1, 1]} : vector<8x512xf32> to vector<8x128xf32>
    %81 = arith.negf %80 : vector<8x128xf32>
    %82 = math.exp %81 : vector<8x128xf32>
    %cst_24 = arith.constant 1.000000e+00 : f32
    %83 = vector.broadcast %cst_24 : f32 to vector<8x128xf32>
    %84 = arith.addf %83, %82 : vector<8x128xf32>
    %85 = arith.divf %83, %84 : vector<8x128xf32>
    %86 = vector.extract_strided_slice %73 {offsets = [0, 256], sizes = [8, 128], strides = [1, 1]} : vector<8x512xf32> to vector<8x128xf32>
    %87 = math.tanh %86 : vector<8x128xf32>
    %88 = vector.extract_strided_slice %73 {offsets = [0, 384], sizes = [8, 128], strides = [1, 1]} : vector<8x512xf32> to vector<8x128xf32>
    %89 = arith.negf %88 : vector<8x128xf32>
    %90 = math.exp %89 : vector<8x128xf32>
    %cst_25 = arith.constant 1.000000e+00 : f32
    %91 = vector.broadcast %cst_25 : f32 to vector<8x128xf32>
    %92 = arith.addf %91, %90 : vector<8x128xf32>
    %93 = arith.divf %91, %92 : vector<8x128xf32>
    %94 = arith.mulf %85, %65 : vector<8x128xf32>
    %95 = arith.mulf %79, %87 : vector<8x128xf32>
    %96 = arith.addf %94, %95 : vector<8x128xf32>
    %97 = math.tanh %96 : vector<8x128xf32>
    %98 = arith.mulf %93, %97 : vector<8x128xf32>
    %99 = arith.addf %68, %98 : vector<8x128xf32>
    %c3_i32 = arith.constant 3 : i32
    %100 = arith.index_cast %c3_i32 : i32 to index
    %c0_26 = arith.constant 0 : index
    %c0_27 = arith.constant 0 : index
    %101 = vector.load %arg2[%100, %c0_26, %c0_27] : memref<8x8x512xf32, #tpu.memory_space<vmem>>, vector<1x8x512xf32>
    %102 = vector.shape_cast %101 : vector<1x8x512xf32> to vector<8x512xf32>
    %cst_28 = arith.constant dense<0.000000e+00> : vector<8x512xf32>
    %103 = tpu.matmul %98, %3, %cst_28 {dimension_numbers = #tpu.dot_dimension_numbers<[1], [0], [0], [1], [0, 0, 1, 1], [], []>} : vector<8x128xf32>, vector<128x512xf32>, vector<8x512xf32> -> vector<8x512xf32>
    %104 = arith.addf %102, %103 : vector<8x512xf32>
    %105 = vector.extract_strided_slice %104 {offsets = [0, 0], sizes = [8, 128], strides = [1, 1]} : vector<8x512xf32> to vector<8x128xf32>
    %106 = arith.negf %105 : vector<8x128xf32>
    %107 = math.exp %106 : vector<8x128xf32>
    %cst_29 = arith.constant 1.000000e+00 : f32
    %108 = vector.broadcast %cst_29 : f32 to vector<8x128xf32>
    %109 = arith.addf %108, %107 : vector<8x128xf32>
    %110 = arith.divf %108, %109 : vector<8x128xf32>
    %111 = vector.extract_strided_slice %104 {offsets = [0, 128], sizes = [8, 128], strides = [1, 1]} : vector<8x512xf32> to vector<8x128xf32>
    %112 = arith.negf %111 : vector<8x128xf32>
    %113 = math.exp %112 : vector<8x128xf32>
    %cst_30 = arith.constant 1.000000e+00 : f32
    %114 = vector.broadcast %cst_30 : f32 to vector<8x128xf32>
    %115 = arith.addf %114, %113 : vector<8x128xf32>
    %116 = arith.divf %114, %115 : vector<8x128xf32>
    %117 = vector.extract_strided_slice %104 {offsets = [0, 256], sizes = [8, 128], strides = [1, 1]} : vector<8x512xf32> to vector<8x128xf32>
    %118 = math.tanh %117 : vector<8x128xf32>
    %119 = vector.extract_strided_slice %104 {offsets = [0, 384], sizes = [8, 128], strides = [1, 1]} : vector<8x512xf32> to vector<8x128xf32>
    %120 = arith.negf %119 : vector<8x128xf32>
    %121 = math.exp %120 : vector<8x128xf32>
    %cst_31 = arith.constant 1.000000e+00 : f32
    %122 = vector.broadcast %cst_31 : f32 to vector<8x128xf32>
    %123 = arith.addf %122, %121 : vector<8x128xf32>
    %124 = arith.divf %122, %123 : vector<8x128xf32>
    %125 = arith.mulf %116, %96 : vector<8x128xf32>
    %126 = arith.mulf %110, %118 : vector<8x128xf32>
    %127 = arith.addf %125, %126 : vector<8x128xf32>
    %128 = math.tanh %127 : vector<8x128xf32>
    %129 = arith.mulf %124, %128 : vector<8x128xf32>
    %130 = arith.addf %99, %129 : vector<8x128xf32>
    %c4_i32 = arith.constant 4 : i32
    %131 = arith.index_cast %c4_i32 : i32 to index
    %c0_32 = arith.constant 0 : index
    %c0_33 = arith.constant 0 : index
    %132 = vector.load %arg2[%131, %c0_32, %c0_33] : memref<8x8x512xf32, #tpu.memory_space<vmem>>, vector<1x8x512xf32>
    %133 = vector.shape_cast %132 : vector<1x8x512xf32> to vector<8x512xf32>
    %cst_34 = arith.constant dense<0.000000e+00> : vector<8x512xf32>
    %134 = tpu.matmul %129, %3, %cst_34 {dimension_numbers = #tpu.dot_dimension_numbers<[1], [0], [0], [1], [0, 0, 1, 1], [], []>} : vector<8x128xf32>, vector<128x512xf32>, vector<8x512xf32> -> vector<8x512xf32>
    %135 = arith.addf %133, %134 : vector<8x512xf32>
    %136 = vector.extract_strided_slice %135 {offsets = [0, 0], sizes = [8, 128], strides = [1, 1]} : vector<8x512xf32> to vector<8x128xf32>
    %137 = arith.negf %136 : vector<8x128xf32>
    %138 = math.exp %137 : vector<8x128xf32>
    %cst_35 = arith.constant 1.000000e+00 : f32
    %139 = vector.broadcast %cst_35 : f32 to vector<8x128xf32>
    %140 = arith.addf %139, %138 : vector<8x128xf32>
    %141 = arith.divf %139, %140 : vector<8x128xf32>
    %142 = vector.extract_strided_slice %135 {offsets = [0, 128], sizes = [8, 128], strides = [1, 1]} : vector<8x512xf32> to vector<8x128xf32>
    %143 = arith.negf %142 : vector<8x128xf32>
    %144 = math.exp %143 : vector<8x128xf32>
    %cst_36 = arith.constant 1.000000e+00 : f32
    %145 = vector.broadcast %cst_36 : f32 to vector<8x128xf32>
    %146 = arith.addf %145, %144 : vector<8x128xf32>
    %147 = arith.divf %145, %146 : vector<8x128xf32>
    %148 = vector.extract_strided_slice %135 {offsets = [0, 256], sizes = [8, 128], strides = [1, 1]} : vector<8x512xf32> to vector<8x128xf32>
    %149 = math.tanh %148 : vector<8x128xf32>
    %150 = vector.extract_strided_slice %135 {offsets = [0, 384], sizes = [8, 128], strides = [1, 1]} : vector<8x512xf32> to vector<8x128xf32>
    %151 = arith.negf %150 : vector<8x128xf32>
    %152 = math.exp %151 : vector<8x128xf32>
    %cst_37 = arith.constant 1.000000e+00 : f32
    %153 = vector.broadcast %cst_37 : f32 to vector<8x128xf32>
    %154 = arith.addf %153, %152 : vector<8x128xf32>
    %155 = arith.divf %153, %154 : vector<8x128xf32>
    %156 = arith.mulf %147, %127 : vector<8x128xf32>
    %157 = arith.mulf %141, %149 : vector<8x128xf32>
    %158 = arith.addf %156, %157 : vector<8x128xf32>
    %159 = math.tanh %158 : vector<8x128xf32>
    %160 = arith.mulf %155, %159 : vector<8x128xf32>
    %161 = arith.addf %130, %160 : vector<8x128xf32>
    %c5_i32 = arith.constant 5 : i32
    %162 = arith.index_cast %c5_i32 : i32 to index
    %c0_38 = arith.constant 0 : index
    %c0_39 = arith.constant 0 : index
    %163 = vector.load %arg2[%162, %c0_38, %c0_39] : memref<8x8x512xf32, #tpu.memory_space<vmem>>, vector<1x8x512xf32>
    %164 = vector.shape_cast %163 : vector<1x8x512xf32> to vector<8x512xf32>
    %cst_40 = arith.constant dense<0.000000e+00> : vector<8x512xf32>
    %165 = tpu.matmul %160, %3, %cst_40 {dimension_numbers = #tpu.dot_dimension_numbers<[1], [0], [0], [1], [0, 0, 1, 1], [], []>} : vector<8x128xf32>, vector<128x512xf32>, vector<8x512xf32> -> vector<8x512xf32>
    %166 = arith.addf %164, %165 : vector<8x512xf32>
    %167 = vector.extract_strided_slice %166 {offsets = [0, 0], sizes = [8, 128], strides = [1, 1]} : vector<8x512xf32> to vector<8x128xf32>
    %168 = arith.negf %167 : vector<8x128xf32>
    %169 = math.exp %168 : vector<8x128xf32>
    %cst_41 = arith.constant 1.000000e+00 : f32
    %170 = vector.broadcast %cst_41 : f32 to vector<8x128xf32>
    %171 = arith.addf %170, %169 : vector<8x128xf32>
    %172 = arith.divf %170, %171 : vector<8x128xf32>
    %173 = vector.extract_strided_slice %166 {offsets = [0, 128], sizes = [8, 128], strides = [1, 1]} : vector<8x512xf32> to vector<8x128xf32>
    %174 = arith.negf %173 : vector<8x128xf32>
    %175 = math.exp %174 : vector<8x128xf32>
    %cst_42 = arith.constant 1.000000e+00 : f32
    %176 = vector.broadcast %cst_42 : f32 to vector<8x128xf32>
    %177 = arith.addf %176, %175 : vector<8x128xf32>
    %178 = arith.divf %176, %177 : vector<8x128xf32>
    %179 = vector.extract_strided_slice %166 {offsets = [0, 256], sizes = [8, 128], strides = [1, 1]} : vector<8x512xf32> to vector<8x128xf32>
    %180 = math.tanh %179 : vector<8x128xf32>
    %181 = vector.extract_strided_slice %166 {offsets = [0, 384], sizes = [8, 128], strides = [1, 1]} : vector<8x512xf32> to vector<8x128xf32>
    %182 = arith.negf %181 : vector<8x128xf32>
    %183 = math.exp %182 : vector<8x128xf32>
    %cst_43 = arith.constant 1.000000e+00 : f32
    %184 = vector.broadcast %cst_43 : f32 to vector<8x128xf32>
    %185 = arith.addf %184, %183 : vector<8x128xf32>
    %186 = arith.divf %184, %185 : vector<8x128xf32>
    %187 = arith.mulf %178, %158 : vector<8x128xf32>
    %188 = arith.mulf %172, %180 : vector<8x128xf32>
    %189 = arith.addf %187, %188 : vector<8x128xf32>
    %190 = math.tanh %189 : vector<8x128xf32>
    %191 = arith.mulf %186, %190 : vector<8x128xf32>
    %192 = arith.addf %161, %191 : vector<8x128xf32>
    %c6_i32 = arith.constant 6 : i32
    %193 = arith.index_cast %c6_i32 : i32 to index
    %c0_44 = arith.constant 0 : index
    %c0_45 = arith.constant 0 : index
    %194 = vector.load %arg2[%193, %c0_44, %c0_45] : memref<8x8x512xf32, #tpu.memory_space<vmem>>, vector<1x8x512xf32>
    %195 = vector.shape_cast %194 : vector<1x8x512xf32> to vector<8x512xf32>
    %cst_46 = arith.constant dense<0.000000e+00> : vector<8x512xf32>
    %196 = tpu.matmul %191, %3, %cst_46 {dimension_numbers = #tpu.dot_dimension_numbers<[1], [0], [0], [1], [0, 0, 1, 1], [], []>} : vector<8x128xf32>, vector<128x512xf32>, vector<8x512xf32> -> vector<8x512xf32>
    %197 = arith.addf %195, %196 : vector<8x512xf32>
    %198 = vector.extract_strided_slice %197 {offsets = [0, 0], sizes = [8, 128], strides = [1, 1]} : vector<8x512xf32> to vector<8x128xf32>
    %199 = arith.negf %198 : vector<8x128xf32>
    %200 = math.exp %199 : vector<8x128xf32>
    %cst_47 = arith.constant 1.000000e+00 : f32
    %201 = vector.broadcast %cst_47 : f32 to vector<8x128xf32>
    %202 = arith.addf %201, %200 : vector<8x128xf32>
    %203 = arith.divf %201, %202 : vector<8x128xf32>
    %204 = vector.extract_strided_slice %197 {offsets = [0, 128], sizes = [8, 128], strides = [1, 1]} : vector<8x512xf32> to vector<8x128xf32>
    %205 = arith.negf %204 : vector<8x128xf32>
    %206 = math.exp %205 : vector<8x128xf32>
    %cst_48 = arith.constant 1.000000e+00 : f32
    %207 = vector.broadcast %cst_48 : f32 to vector<8x128xf32>
    %208 = arith.addf %207, %206 : vector<8x128xf32>
    %209 = arith.divf %207, %208 : vector<8x128xf32>
    %210 = vector.extract_strided_slice %197 {offsets = [0, 256], sizes = [8, 128], strides = [1, 1]} : vector<8x512xf32> to vector<8x128xf32>
    %211 = math.tanh %210 : vector<8x128xf32>
    %212 = vector.extract_strided_slice %197 {offsets = [0, 384], sizes = [8, 128], strides = [1, 1]} : vector<8x512xf32> to vector<8x128xf32>
    %213 = arith.negf %212 : vector<8x128xf32>
    %214 = math.exp %213 : vector<8x128xf32>
    %cst_49 = arith.constant 1.000000e+00 : f32
    %215 = vector.broadcast %cst_49 : f32 to vector<8x128xf32>
    %216 = arith.addf %215, %214 : vector<8x128xf32>
    %217 = arith.divf %215, %216 : vector<8x128xf32>
    %218 = arith.mulf %209, %189 : vector<8x128xf32>
    %219 = arith.mulf %203, %211 : vector<8x128xf32>
    %220 = arith.addf %218, %219 : vector<8x128xf32>
    %221 = math.tanh %220 : vector<8x128xf32>
    %222 = arith.mulf %217, %221 : vector<8x128xf32>
    %223 = arith.addf %192, %222 : vector<8x128xf32>
    %c7_i32 = arith.constant 7 : i32
    %224 = arith.index_cast %c7_i32 : i32 to index
    %c0_50 = arith.constant 0 : index
    %c0_51 = arith.constant 0 : index
    %225 = vector.load %arg2[%224, %c0_50, %c0_51] : memref<8x8x512xf32, #tpu.memory_space<vmem>>, vector<1x8x512xf32>
    %226 = vector.shape_cast %225 : vector<1x8x512xf32> to vector<8x512xf32>
    %cst_52 = arith.constant dense<0.000000e+00> : vector<8x512xf32>
    %227 = tpu.matmul %222, %3, %cst_52 {dimension_numbers = #tpu.dot_dimension_numbers<[1], [0], [0], [1], [0, 0, 1, 1], [], []>} : vector<8x128xf32>, vector<128x512xf32>, vector<8x512xf32> -> vector<8x512xf32>
    %228 = arith.addf %226, %227 : vector<8x512xf32>
    %229 = vector.extract_strided_slice %228 {offsets = [0, 0], sizes = [8, 128], strides = [1, 1]} : vector<8x512xf32> to vector<8x128xf32>
    %230 = arith.negf %229 : vector<8x128xf32>
    %231 = math.exp %230 : vector<8x128xf32>
    %cst_53 = arith.constant 1.000000e+00 : f32
    %232 = vector.broadcast %cst_53 : f32 to vector<8x128xf32>
    %233 = arith.addf %232, %231 : vector<8x128xf32>
    %234 = arith.divf %232, %233 : vector<8x128xf32>
    %235 = vector.extract_strided_slice %228 {offsets = [0, 128], sizes = [8, 128], strides = [1, 1]} : vector<8x512xf32> to vector<8x128xf32>
    %236 = arith.negf %235 : vector<8x128xf32>
    %237 = math.exp %236 : vector<8x128xf32>
    %cst_54 = arith.constant 1.000000e+00 : f32
    %238 = vector.broadcast %cst_54 : f32 to vector<8x128xf32>
    %239 = arith.addf %238, %237 : vector<8x128xf32>
    %240 = arith.divf %238, %239 : vector<8x128xf32>
    %241 = vector.extract_strided_slice %228 {offsets = [0, 256], sizes = [8, 128], strides = [1, 1]} : vector<8x512xf32> to vector<8x128xf32>
    %242 = math.tanh %241 : vector<8x128xf32>
    %243 = vector.extract_strided_slice %228 {offsets = [0, 384], sizes = [8, 128], strides = [1, 1]} : vector<8x512xf32> to vector<8x128xf32>
    %244 = arith.negf %243 : vector<8x128xf32>
    %245 = math.exp %244 : vector<8x128xf32>
    %cst_55 = arith.constant 1.000000e+00 : f32
    %246 = vector.broadcast %cst_55 : f32 to vector<8x128xf32>
    %247 = arith.addf %246, %245 : vector<8x128xf32>
    %248 = arith.divf %246, %247 : vector<8x128xf32>
    %249 = arith.mulf %240, %220 : vector<8x128xf32>
    %250 = arith.mulf %234, %242 : vector<8x128xf32>
    %251 = arith.addf %249, %250 : vector<8x128xf32>
    %252 = math.tanh %251 : vector<8x128xf32>
    %253 = arith.mulf %248, %252 : vector<8x128xf32>
    %254 = arith.addf %223, %253 : vector<8x128xf32>
    %c8_i32 = arith.constant 8 : i32
    %c0_56 = arith.constant 0 : index
    %c0_57 = arith.constant 0 : index
    %255 = vector.load %arg7[%c0_56, %c0_57] : memref<8x128xf32, #tpu.memory_space<vmem>>, vector<8x128xf32>
    tpu.vector_store %arg7[%c0_56, %c0_57], %253 {strides = array<i32>} : memref<8x128xf32, #tpu.memory_space<vmem>>, vector<8x128xf32>,
    %c0_58 = arith.constant 0 : index
    %c0_59 = arith.constant 0 : index
    %256 = vector.load %arg8[%c0_58, %c0_59] : memref<8x128xf32, #tpu.memory_space<vmem>>, vector<8x128xf32>
    tpu.vector_store %arg8[%c0_58, %c0_59], %251 {strides = array<i32>} : memref<8x128xf32, #tpu.memory_space<vmem>>, vector<8x128xf32>,
    %c0_60 = arith.constant 0 : index
    %c0_61 = arith.constant 0 : index
    %257 = vector.load %arg6[%c0_60, %c0_61] : memref<8x128xf32, #tpu.memory_space<vmem>>, vector<8x128xf32>
    tpu.vector_store %arg6[%c0_60, %c0_61], %254 {strides = array<i32>} : memref<8x128xf32, #tpu.memory_space<vmem>>, vector<8x128xf32>,
    %c0_i32_62 = arith.constant 0 : i32
    %258 = arith.cmpi eq, %arg1, %c0_i32_62 : i32
    %259 = arith.extui %258 : i1 to i32
    %c0_i32_63 = arith.constant 0 : i32
    %260 = arith.cmpi ne, %259, %c0_i32_63 : i32
    scf.if %260 {
      %c0_64 = arith.constant 0 : index
      %c0_65 = arith.constant 0 : index
      %261 = vector.load %arg6[%c0_64, %c0_65] : memref<8x128xf32, #tpu.memory_space<vmem>>, vector<8x128xf32>
      %cst_66 = arith.constant 1.250000e-01 : f32
      %262 = vector.broadcast %cst_66 : f32 to vector<8x128xf32>
      %263 = arith.mulf %261, %262 : vector<8x128xf32>
      %c0_67 = arith.constant 0 : index
      %c0_68 = arith.constant 0 : index
      %264 = vector.load %arg6[%c0_67, %c0_68] : memref<8x128xf32, #tpu.memory_space<vmem>>, vector<8x128xf32>
      tpu.vector_store %arg6[%c0_67, %c0_68], %263 {strides = array<i32>} : memref<8x128xf32, #tpu.memory_space<vmem>>, vector<8x128xf32>,
    } else {
    }
    return
  }
  func.func @transform_0(%arg0: i32, %arg1: i32) -> (i32, i32, i32) {
    %c0_i32 = arith.constant 0 : i32
    %c0_i32_0 = arith.constant 0 : i32
    return %arg1, %arg0, %c0_i32 : i32, i32, i32
  }
  func.func @transform_1(%arg0: i32, %arg1: i32) -> (i32, i32) {
    %c0_i32 = arith.constant 0 : i32
    %c0_i32_0 = arith.constant 0 : i32
    %c0_i32_1 = arith.constant 0 : i32
    return %c0_i32, %c0_i32_0 : i32, i32
  }
  func.func @transform_2(%arg0: i32, %arg1: i32) -> (i32, i32) {
    %c0_i32 = arith.constant 0 : i32
    %c0_i32_0 = arith.constant 0 : i32
    return %arg0, %c0_i32 : i32, i32
  }
  func.func @transform_3(%arg0: i32, %arg1: i32) -> (i32, i32) {
    %c0_i32 = arith.constant 0 : i32
    %c0_i32_0 = arith.constant 0 : i32
    return %arg0, %c0_i32 : i32, i32
  }
  func.func @transform_4(%arg0: i32, %arg1: i32) -> (i32, i32) {
    %c0_i32 = arith.constant 0 : i32
    %c0_i32_0 = arith.constant 0 : i32
    return %arg0, %c0_i32 : i32, i32
  }
}

</mosaic_0001>

<bundles_post_ra>
// kernel: tpu_custom_call.1
= control target key start
LH: loop header
LB: loop body
LE: loop exit
PB: predicated region body
PF: predicated region fallthrough
CT: control target
= control target key end

     0   :  { %9 = vsyncpa [#allocation5], 0  ;;  %s2624_s0 = inlined_call_operand.hbm [shape: f32[8,8,512], index: 0, kind: input, shape index: {}]   ;;  %s2625_s1 = inlined_call_operand.hbm [shape: f32[128,512], index: 1, kind: input, shape index: {}]   ;;  %s2626_s2 = inlined_call_operand.hbm [shape: f32[8,128], index: 2, kind: input, shape index: {}]   ;;  %s2627_s3 = inlined_call_operand.hbm [shape: f32[8,128], index: 3, kind: input, shape index: {}]   ;;  %s2628_s4 = inlined_call_operand.hbm [shape: f32[8,128], index: 4, kind: output, shape index: {}]  }
   0x1   :  { %10 = vsyncpa [#allocation8], 0 }
   0x2   :  { %11 = vsyncpa [#allocation11], 0 }
   0x3   :  { %12 = vsyncpa [#allocation6], 0  ;;  %s30_s17 = sshll.u32 %s2625_s1, 4  ;;  %s1756_s18 = smov [#allocation7]   ;;  %s31_s17 = int_to_ptr.hbm [resolvable:$true] %s30_s17 }
   0x4   :  { %s32_s19 = sshll.u32 %s1756_s18, 4  ;;  %s17_s22 = sshll.u32 %s2624_s0, 4  ;;  %s33_s19 = int_to_ptr.vmem [resolvable:$true] %s32_s19  ;;  %s18_s22 = int_to_ptr.hbm [resolvable:$true] %s17_s22 }
   0x5   :  { %s1757_s23 = smov 512   ;;  %s1758_s24 = smov 32  }
   0x6   :  { %38 = dma.hbm_to_vmem [thread:$0]  %s31_s17, 8192, %s33_s19, [#allocation8], %s1757_s23, %s1757_s23, %s1758_s24  }
   0x7   :  { %s1759_s25 = smov [#allocation4]   ;;  %s44_s29 = sshll.u32 %s2626_s2, 4  ;;  %s45_s29 = int_to_ptr.hbm [resolvable:$true] %s44_s29 }
   0x8   :  { %s19_s26 = sshll.u32 %s1759_s25, 4  ;;  %s55_s5 = sshll.u32 %s2627_s3, 4  ;;  %s20_s26 = int_to_ptr.vmem [resolvable:$true] %s19_s26  ;;  %s56_s5 = int_to_ptr.hbm [resolvable:$true] %s55_s5 }
   0x9   :  { %25 = dma.hbm_to_vmem [thread:$0]  %s18_s22, 4096, %s20_s26, [#allocation5], %s1757_s23, %s1757_s23, %s1758_s24  }
   0xa   :  { %s1760_s6 = smov [#allocation9]   ;;  %s1761_s0 = smov [#allocation10]  }
   0xb   :  { %s46_s7 = sshll.u32 %s1760_s6, 4  ;;  %s57_s8 = sshll.u32 %s1761_s0, 4  ;;  %s47_s7 = int_to_ptr.vmem [resolvable:$true] %s46_s7  ;;  %s58_s8 = int_to_ptr.vmem [resolvable:$true] %s57_s8 }
   0xc   :  { %49 = dma.hbm_to_vmem [thread:$0]  %s45_s29, 128, %s47_s7, [#allocation8]  }
   0xd   :  { %60 = dma.hbm_to_vmem [thread:$0]  %s56_s5, 128, %s58_s8, [#allocation11]  }
   0xe   :  { %1748 = dma.done.wait [#allocation5], 4096  }
   0xf   :  { %1749 = vsyncadd [#allocation5], 4294963200 }
  0x10   :  { %1750 = dma.done.wait [#allocation8], 8320  }
  0x11   :  { %1751 = vsyncadd [#allocation8], 4294958976 }
  0x12   :  { %1752 = dma.done.wait [#allocation11], 128  }
  0x13   :  { %1753 = vsyncadd [#allocation11], 4294967168  ;;  %v1800_v0 = vld [vmem:[#allocation7 + $0x1e0] sm:$0xff]  ;;  %v1802_v1 = vld [vmem:[#allocation7 + $0x1e8] sm:$0xff]  ;;  %s1762_s2 = smov [#allocation12]   ;;  %s1392_s11 = sshll.u32 %s2628_s4, 4  ;;  %s1393_s11 = int_to_ptr.hbm [resolvable:$true] %s1392_s11 }
  0x14   :  { %2739 = vst [vmem:[#allocation17_spill] sm:$0xff] %v1800_v0  ;;  %v1804_v2 = vld [vmem:[#allocation7 + $0x1f8] sm:$0xff]  ;;  %157 = vmatpush.msra.mxu0 %v1800_v0  ;;  %177 = vmatpush.msra.mxu1 %v1802_v1  ;;  %v1808_v3 = vld [vmem:[#allocation7 + $0x1c0] sm:$0xff]  ;;  %v1810_v4 = vld [vmem:[#allocation7 + $0x1c8] sm:$0xff]  ;;  %s1390_s3 = sshll.u32 %s1762_s2, 4  ;;  %s1391_s3 = int_to_ptr.vmem [resolvable:$true] %s1390_s3 }
  0x15   :  { %v1812_v5 = vld [vmem:[#allocation7 + $0x1d8] sm:$0xff]  ;;  %217 = vmatpush.msra.mxu3 %v1804_v2  ;;  %v1815_v6 = vld [vmem:[#allocation7 + $0x1a0] sm:$0xff]  ;;  %v1817_v7 = vld [vmem:[#allocation7 + $0x1a8] sm:$0xff] }
  0x16   :  { %158 = vmatpush.msra.mxu0 %v1808_v3  ;;  %178 = vmatpush.msra.mxu1 %v1810_v4  ;;  %v1821_v8 = vld [vmem:[#allocation7 + $0x1b8] sm:$0xff]  ;;  %v1824_v9 = vld [vmem:[#allocation7 + $0x180] sm:$0xff]  ;;  %v1826_v10 = vld [vmem:[#allocation7 + $0x188] sm:$0xff] }
  0x17   :  { %218 = vmatpush.msra.mxu3 %v1812_v5  ;;  %v1830_v11 = vld [vmem:[#allocation7 + $0x198] sm:$0xff]  ;;  %v1833_v12 = vld [vmem:[#allocation7 + $0x160] sm:$0xff]  ;;  %v1835_v13 = vld [vmem:[#allocation7 + $0x168] sm:$0xff] }
  0x18   :  { %159 = vmatpush.msra.mxu0 %v1815_v6  ;;  %179 = vmatpush.msra.mxu1 %v1817_v7  ;;  %v1839_v14 = vld [vmem:[#allocation7 + $0x178] sm:$0xff]  ;;  %v1842_v15 = vld [vmem:[#allocation7 + $0x140] sm:$0xff]  ;;  %v1844_v16 = vld [vmem:[#allocation7 + $0x148] sm:$0xff] }
  0x19   :  { %219 = vmatpush.msra.mxu3 %v1821_v8  ;;  %v1846_v17 = vld [vmem:[#allocation7 + $0x1f0] sm:$0xff]  ;;  %v1850_v18 = vld [vmem:[#allocation7 + $0x158] sm:$0xff]  ;;  %v1855_v20 = vld [vmem:[#allocation7 + $0x120] sm:$0xff] }
  0x1a   :  { %160 = vmatpush.msra.mxu0 %v1824_v9  ;;  %180 = vmatpush.msra.mxu1 %v1826_v10  ;;  %v1852_v19 = vld [vmem:[#allocation7 + $0x1d0] sm:$0xff]  ;;  %v1857_v21 = vld [vmem:[#allocation7 + $0x128] sm:$0xff]  ;;  %v1862_v22 = vld [vmem:[#allocation7 + $0x138] sm:$0xff] }
  0x1b   :  { %220 = vmatpush.msra.mxu3 %v1830_v11  ;;  %197 = vmatpush.msra.mxu2 %v1846_v17  ;;  %v1864_v23 = vld [vmem:[#allocation7 + $0x1b0] sm:$0xff]  ;;  %v1867_v24 = vld [vmem:[#allocation7 + $0x100] sm:$0xff]  ;;  %v1869_v25 = vld [vmem:[#allocation7 + $0x108] sm:$0xff] }
  0x1c   :  { %161 = vmatpush.msra.mxu0 %v1833_v12  ;;  %181 = vmatpush.msra.mxu1 %v1835_v13  ;;  %v1874_v26 = vld [vmem:[#allocation7 + $0x118] sm:$0xff]  ;;  %v1876_v27 = vld [vmem:[#allocation7 + $0x190] sm:$0xff]  ;;  %v1879_v28 = vld [vmem:[#allocation7 + $0xe0] sm:$0xff] }
  0x1d   :  { %221 = vmatpush.msra.mxu3 %v1839_v14  ;;  %198 = vmatpush.msra.mxu2 %v1852_v19  ;;  %v1881_v29 = vld [vmem:[#allocation7 + $0xe8] sm:$0xff]  ;;  %v1886_v30 = vld [vmem:[#allocation7 + $0xf8] sm:$0xff]  ;;  %v1888_v31 = vld [vmem:[#allocation7 + $0x170] sm:$0xff] }
  0x1e   :  { %162 = vmatpush.msra.mxu0 %v1842_v15  ;;  %182 = vmatpush.msra.mxu1 %v1844_v16  ;;  %v1891_v32 = vld [vmem:[#allocation7 + $0xc0] sm:$0xff]  ;;  %v1893_v33 = vld [vmem:[#allocation7 + $0xc8] sm:$0xff]  ;;  %v1898_v34 = vld [vmem:[#allocation7 + $0xd8] sm:$0xff] }
  0x1f   :  { %222 = vmatpush.msra.mxu3 %v1850_v18  ;;  %199 = vmatpush.msra.mxu2 %v1864_v23  ;;  %2740 = vst [vmem:[#allocation18_spill] sm:$0xff] %v1893_v33  ;;  %v1900_v35 = vld [vmem:[#allocation7 + $0x150] sm:$0xff]  ;;  %v1903_v36 = vld [vmem:[#allocation7 + $0xa0] sm:$0xff]  ;;  %v1905_v37 = vld [vmem:[#allocation7 + $0xa8] sm:$0xff] }
  0x20   :  { %163 = vmatpush.msra.mxu0 %v1855_v20  ;;  %183 = vmatpush.msra.mxu1 %v1857_v21  ;;  %2741 = vst [vmem:[#allocation19_spill] sm:$0xff] %v1898_v34  ;;  %v1910_v38 = vld [vmem:[#allocation7 + $0xb8] sm:$0xff]  ;;  %v1912_v39 = vld [vmem:[#allocation7 + $0x130] sm:$0xff]  ;;  %v1915_v40 = vld [vmem:[#allocation7 + $0x80] sm:$0xff] }
  0x21   :  { %223 = vmatpush.msra.mxu3 %v1862_v22  ;;  %200 = vmatpush.msra.mxu2 %v1876_v27  ;;  %2742 = vst [vmem:[#allocation20_spill] sm:$0xff] %v1903_v36  ;;  %v1917_v41 = vld [vmem:[#allocation7 + $0x88] sm:$0xff]  ;;  %v1922_v42 = vld [vmem:[#allocation7 + $0x98] sm:$0xff]  ;;  %v1924_v43 = vld [vmem:[#allocation7 + $0x110] sm:$0xff] }
  0x22   :  { %164 = vmatpush.msra.mxu0 %v1867_v24  ;;  %184 = vmatpush.msra.mxu1 %v1869_v25  ;;  %2743 = vst [vmem:[#allocation21_spill] sm:$0xff] %v1905_v37  ;;  %v1927_v44 = vld [vmem:[#allocation7 + $0x60] sm:$0xff]  ;;  %v1929_v45 = vld [vmem:[#allocation7 + $0x68] sm:$0xff]  ;;  %v1934_v46 = vld [vmem:[#allocation7 + $0x78] sm:$0xff] }
  0x23   :  { %224 = vmatpush.msra.mxu3 %v1874_v26  ;;  %201 = vmatpush.msra.mxu2 %v1888_v31  ;;  %2744 = vst [vmem:[#allocation22_spill] sm:$0xff] %v1910_v38  ;;  %v1936_v47 = vld [vmem:[#allocation7 + $0xf0] sm:$0xff]  ;;  %v1939_v48 = vld [vmem:[#allocation7 + $0x40] sm:$0xff]  ;;  %v1941_v49 = vld [vmem:[#allocation7 + $0x48] sm:$0xff] }
  0x24   :  { %165 = vmatpush.msra.mxu0 %v1879_v28  ;;  %185 = vmatpush.msra.mxu1 %v1881_v29  ;;  %2745 = vst [vmem:[#allocation23_spill] sm:$0xff] %v1915_v40  ;;  %v1946_v50 = vld [vmem:[#allocation7 + $0x58] sm:$0xff]  ;;  %v1948_v51 = vld [vmem:[#allocation7 + $0xd0] sm:$0xff]  ;;  %v1951_v52 = vld [vmem:[#allocation7 + $0x20] sm:$0xff] }
  0x25   :  { %225 = vmatpush.msra.mxu3 %v1886_v30  ;;  %2746 = vst [vmem:[#allocation24_spill] sm:$0xff] %v1917_v41  ;;  %202 = vmatpush.msra.mxu2 %v1900_v35  ;;  %v1953_v53 = vld [vmem:[#allocation7 + $0x28] sm:$0xff]  ;;  %v1958_v54 = vld [vmem:[#allocation7 + $0x38] sm:$0xff]  ;;  %v1960_v55 = vld [vmem:[#allocation7 + $0xb0] sm:$0xff] }
  0x26   :  { %166 = vmatpush.msra.mxu0 %v1891_v32  ;;  %186 = vmatpush.msra.mxu1 %v1893_v33  ;;  %2747 = vst [vmem:[#allocation25_spill] sm:$0xff] %v1922_v42  ;;  %v1963_v56 = vld [vmem:[#allocation7] sm:$0xff]  ;;  %v1965_v57 = vld [vmem:[#allocation7 + $0x8] sm:$0xff]  ;;  %v1970_v58 = vld [vmem:[#allocation7 + $0x18] sm:$0xff] }
  0x27   :  { %226 = vmatpush.msra.mxu3 %v1898_v34  ;;  %2748 = vst [vmem:[#allocation26_spill] sm:$0xff] %v1927_v44  ;;  %203 = vmatpush.msra.mxu2 %v1912_v39  ;;  %v81_v59 = vld [vmem:[#allocation9] sm:$0xff]  ;;  %v1976_v60 = vld [vmem:[#allocation7 + $0x90] sm:$0xff] }
  0x28   :  { %167 = vmatpush.msra.mxu0 %v1903_v36  ;;  %187 = vmatpush.msra.mxu1 %v1905_v37  ;;  %2749 = vst [vmem:[#allocation27_spill] sm:$0xff] %v1929_v45  ;;  %v1979_v61 = vld [vmem:[#allocation7 + $0x70] sm:$0xff] }
  0x29   :  { %227 = vmatpush.msra.mxu3 %v1910_v38  ;;  %2750 = vst [vmem:[#allocation28_spill] sm:$0xff] %v1934_v46  ;;  %204 = vmatpush.msra.mxu2 %v1924_v43  ;;  %v1983_v62 = vld [vmem:[#allocation7 + $0x50] sm:$0xff] }
  0x2a   :  { %168 = vmatpush.msra.mxu0 %v1915_v40  ;;  %188 = vmatpush.msra.mxu1 %v1917_v41  ;;  %2751 = vst [vmem:[#allocation29_spill] sm:$0xff] %v1939_v48  ;;  %v1989_v63 = vld [vmem:[#allocation7 + $0x30] sm:$0xff] }
  0x2b   :  { %228 = vmatpush.msra.mxu3 %v1922_v42  ;;  %2752 = vst [vmem:[#allocation30_spill] sm:$0xff] %v1941_v49  ;;  %205 = vmatpush.msra.mxu2 %v1936_v47 }
  0x2c   :  { %169 = vmatpush.msra.mxu0 %v1927_v44  ;;  %189 = vmatpush.msra.mxu1 %v1929_v45  ;;  %2753 = vst [vmem:[#allocation31_spill] sm:$0xff] %v1946_v50 }
  0x2d   :  { %2754 = vst [vmem:[#allocation32_spill] sm:$0xff] %v1948_v51  ;;  %229 = vmatpush.msra.mxu3 %v1934_v46  ;;  %206 = vmatpush.msra.mxu2 %v1948_v51 }
  0x2e   :  { %2755 = vst [vmem:[#allocation33_spill] sm:$0xff] %v1951_v52  ;;  %170 = vmatpush.msra.mxu0 %v1939_v48  ;;  %190 = vmatpush.msra.mxu1 %v1941_v49 }
  0x2f   :  { %2756 = vst [vmem:[#allocation34_spill] sm:$0xff] %v1953_v53  ;;  %230 = vmatpush.msra.mxu3 %v1946_v50  ;;  %207 = vmatpush.msra.mxu2 %v1960_v55 }
  0x30   :  { %2757 = vst [vmem:[#allocation35_spill] sm:$0xff] %v1958_v54  ;;  %171 = vmatpush.msra.mxu0 %v1951_v52  ;;  %191 = vmatpush.msra.mxu1 %v1953_v53 }
  0x31   :  { %2758 = vst [vmem:[#allocation36_spill] sm:$0xff] %v1960_v55  ;;  %231 = vmatpush.msra.mxu3 %v1958_v54  ;;  %208 = vmatpush.msra.mxu2 %v1976_v60 }
  0x32   :  { %2759 = vst [vmem:[#allocation37_spill] sm:$0xff] %v1963_v56  ;;  %172 = vmatpush.msra.mxu0 %v1963_v56  ;;  %192 = vmatpush.msra.mxu1 %v1965_v57 }
  0x33   :  { %2760 = vst [vmem:[#allocation38_spill] sm:$0xff] %v1965_v57  ;;  %232 = vmatpush.msra.mxu3 %v1970_v58  ;;  %173 = vmatmul.f32.vlgmr.msra.gmra.mxu0 %v81_v59 }
  0x34   :  { %2761 = vst [vmem:[#allocation39_spill] sm:$0xff] %v1970_v58  ;;  %193 = vmatmul.f32.vlgmr.msra.gmra.mxu1 %v81_v59  ;;  %233 = vmatmul.f32.vlgmr.msra.gmra.mxu3 %v81_v59 }
  0x35   :  { %2762 = vst [vmem:[#allocation40_spill] sm:$0xff] %v1976_v60  ;;  %310 = vmatpush.msrb.mxu0 %v1800_v0  ;;  %330 = vmatpush.msrb.mxu1 %v1802_v1  ;;  %v1995_v0 = vld [vmem:[#allocation7 + $0x10] sm:$0xff] }
  0x36   :  { %2763 = vst [vmem:[#allocation41_spill] sm:$0xff] %v1979_v61  ;;  %370 = vmatpush.msrb.mxu3 %v1804_v2  ;;  %209 = vmatpush.msra.mxu2 %v1979_v61 }
  0x37   :  { %2764 = vst [vmem:[#allocation42_spill] sm:$0xff] %v1983_v62  ;;  %311 = vmatpush.msrb.mxu0 %v1808_v3  ;;  %331 = vmatpush.msrb.mxu1 %v1810_v4 }
  0x38   :  { %2765 = vst [vmem:[#allocation43_spill] sm:$0xff] %v1989_v63  ;;  %371 = vmatpush.msrb.mxu3 %v1812_v5  ;;  %210 = vmatpush.msra.mxu2 %v1983_v62 }
  0x39   :  { %312 = vmatpush.msrb.mxu0 %v1815_v6  ;;  %2766 = vst [vmem:[#allocation44_spill] sm:$0xff] %v1995_v0  ;;  %332 = vmatpush.msrb.mxu1 %v1817_v7 }
  0x3a   :  { %372 = vmatpush.msrb.mxu3 %v1821_v8  ;;  %211 = vmatpush.msra.mxu2 %v1989_v63 }
  0x3b   :  { %313 = vmatpush.msrb.mxu0 %v1824_v9  ;;  %333 = vmatpush.msrb.mxu1 %v1826_v10 }
  0x3c   :  { %373 = vmatpush.msrb.mxu3 %v1830_v11  ;;  %212 = vmatpush.msra.mxu2 %v1995_v0 }
  0x3d   :  { %314 = vmatpush.msrb.mxu0 %v1833_v12  ;;  %213 = vmatmul.f32.vlgmr.msra.gmra.mxu2 %v81_v59  ;;  %v2767_v59 = vld [vmem:[#allocation17_spill] sm:$0xff] }
  0x3e   :  { %334 = vmatpush.msrb.mxu1 %v1835_v13  ;;  %350 = vmatpush.msrb.mxu2 %v1846_v17 }
  0x3f   :  { %374 = vmatpush.msrb.mxu3 %v1839_v14  ;;  %315 = vmatpush.msrb.mxu0 %v1842_v15 }
  0x40   :  { %335 = vmatpush.msrb.mxu1 %v1844_v16  ;;  %351 = vmatpush.msrb.mxu2 %v1852_v19 }
  0x41   :  { %375 = vmatpush.msrb.mxu3 %v1850_v18  ;;  %316 = vmatpush.msrb.mxu0 %v1855_v20 }
  0x42   :  { %336 = vmatpush.msrb.mxu1 %v1857_v21  ;;  %352 = vmatpush.msrb.mxu2 %v1864_v23 }
  0x43   :  { %376 = vmatpush.msrb.mxu3 %v1862_v22  ;;  %317 = vmatpush.msrb.mxu0 %v1867_v24 }
  0x44   :  { %337 = vmatpush.msrb.mxu1 %v1869_v25  ;;  %353 = vmatpush.msrb.mxu2 %v1876_v27 }
  0x45   :  { %377 = vmatpush.msrb.mxu3 %v1874_v26  ;;  %318 = vmatpush.msrb.mxu0 %v1879_v28 }
  0x46   :  { %338 = vmatpush.msrb.mxu1 %v1881_v29  ;;  %354 = vmatpush.msrb.mxu2 %v1888_v31 }
  0x47   :  { %378 = vmatpush.msrb.mxu3 %v1886_v30  ;;  %319 = vmatpush.msrb.mxu0 %v1891_v32 }
  0x48   :  { %339 = vmatpush.msrb.mxu1 %v1893_v33  ;;  %355 = vmatpush.msrb.mxu2 %v1900_v35 }
  0x49   :  { %379 = vmatpush.msrb.mxu3 %v1898_v34  ;;  %320 = vmatpush.msrb.mxu0 %v1903_v36 }
  0x4a   :  { %340 = vmatpush.msrb.mxu1 %v1905_v37  ;;  %356 = vmatpush.msrb.mxu2 %v1912_v39 }
  0x4b   :  { %380 = vmatpush.msrb.mxu3 %v1910_v38  ;;  %321 = vmatpush.msrb.mxu0 %v1915_v40 }
  0x4c   :  { %341 = vmatpush.msrb.mxu1 %v1917_v41  ;;  %357 = vmatpush.msrb.mxu2 %v1924_v43 }
  0x4d   :  { %381 = vmatpush.msrb.mxu3 %v1922_v42  ;;  %322 = vmatpush.msrb.mxu0 %v1927_v44 }
  0x4e   :  { %342 = vmatpush.msrb.mxu1 %v1929_v45  ;;  %358 = vmatpush.msrb.mxu2 %v1936_v47 }
  0x4f   :  { %382 = vmatpush.msrb.mxu3 %v1934_v46  ;;  %323 = vmatpush.msrb.mxu0 %v1939_v48 }
  0x50   :  { %343 = vmatpush.msrb.mxu1 %v1941_v49  ;;  %359 = vmatpush.msrb.mxu2 %v1948_v51 }
  0x51   :  { %383 = vmatpush.msrb.mxu3 %v1946_v50  ;;  %324 = vmatpush.msrb.mxu0 %v1951_v52 }
  0x52   :  { %344 = vmatpush.msrb.mxu1 %v1953_v53  ;;  %360 = vmatpush.msrb.mxu2 %v1960_v55 }
  0x53   :  { %384 = vmatpush.msrb.mxu3 %v1958_v54  ;;  %325 = vmatpush.msrb.mxu0 %v1963_v56 }
  0x54   :  { %345 = vmatpush.msrb.mxu1 %v1965_v57  ;;  %361 = vmatpush.msrb.mxu2 %v1976_v60 }
  0x55   :  { %385 = vmatpush.msrb.mxu3 %v1970_v58  ;;  %463 = vmatpush.msra.mxu0 %v2767_v59 }
  0x56   :  { %483 = vmatpush.msra.mxu1 %v1802_v1  ;;  %362 = vmatpush.msrb.mxu2 %v1979_v61 }
  0x57   :  { %523 = vmatpush.msra.mxu3 %v1804_v2  ;;  %464 = vmatpush.msra.mxu0 %v1808_v3 }
  0x58   :  { %484 = vmatpush.msra.mxu1 %v1810_v4  ;;  %363 = vmatpush.msrb.mxu2 %v1983_v62 }
  0x59   :  { %524 = vmatpush.msra.mxu3 %v1812_v5  ;;  %465 = vmatpush.msra.mxu0 %v1815_v6 }
  0x5a   :  { %485 = vmatpush.msra.mxu1 %v1817_v7  ;;  %364 = vmatpush.msrb.mxu2 %v1989_v63 }
  0x5b   :  { %525 = vmatpush.msra.mxu3 %v1821_v8  ;;  %466 = vmatpush.msra.mxu0 %v1824_v9 }
  0x5c   :  { %486 = vmatpush.msra.mxu1 %v1826_v10  ;;  %365 = vmatpush.msrb.mxu2 %v1995_v0 }
  0x5d   :  { %526 = vmatpush.msra.mxu3 %v1830_v11  ;;  %467 = vmatpush.msra.mxu0 %v1833_v12 }
  0x5e   :  { %503 = vmatpush.msra.mxu2 %v1846_v17  ;;  %487 = vmatpush.msra.mxu1 %v1835_v13 }
  0x5f   :  { %527 = vmatpush.msra.mxu3 %v1839_v14  ;;  %468 = vmatpush.msra.mxu0 %v1842_v15 }
  0x60   :  { %504 = vmatpush.msra.mxu2 %v1852_v19  ;;  %488 = vmatpush.msra.mxu1 %v1844_v16 }
  0x61   :  { %528 = vmatpush.msra.mxu3 %v1850_v18  ;;  %469 = vmatpush.msra.mxu0 %v1855_v20 }
  0x62   :  { %505 = vmatpush.msra.mxu2 %v1864_v23  ;;  %489 = vmatpush.msra.mxu1 %v1857_v21 }
  0x63   :  { %529 = vmatpush.msra.mxu3 %v1862_v22  ;;  %470 = vmatpush.msra.mxu0 %v1867_v24 }
  0x64   :  { %506 = vmatpush.msra.mxu2 %v1876_v27  ;;  %490 = vmatpush.msra.mxu1 %v1869_v25 }
  0x65   :  { %530 = vmatpush.msra.mxu3 %v1874_v26  ;;  %471 = vmatpush.msra.mxu0 %v1879_v28 }
  0x66   :  { %507 = vmatpush.msra.mxu2 %v1888_v31  ;;  %491 = vmatpush.msra.mxu1 %v1881_v29 }
  0x67   :  { %531 = vmatpush.msra.mxu3 %v1886_v30  ;;  %472 = vmatpush.msra.mxu0 %v1891_v32 }
  0x68   :  { %508 = vmatpush.msra.mxu2 %v1900_v35  ;;  %492 = vmatpush.msra.mxu1 %v1893_v33 }
  0x69   :  { %532 = vmatpush.msra.mxu3 %v1898_v34  ;;  %473 = vmatpush.msra.mxu0 %v1903_v36 }
  0x6a   :  { %509 = vmatpush.msra.mxu2 %v1912_v39  ;;  %493 = vmatpush.msra.mxu1 %v1905_v37 }
  0x6b   :  { %533 = vmatpush.msra.mxu3 %v1910_v38  ;;  %474 = vmatpush.msra.mxu0 %v1915_v40 }
  0x6c   :  { %510 = vmatpush.msra.mxu2 %v1924_v43  ;;  %494 = vmatpush.msra.mxu1 %v1917_v41 }
  0x6d   :  { %534 = vmatpush.msra.mxu3 %v1922_v42  ;;  %475 = vmatpush.msra.mxu0 %v1927_v44 }
  0x6e   :  { %511 = vmatpush.msra.mxu2 %v1936_v47  ;;  %495 = vmatpush.msra.mxu1 %v1929_v45 }
  0x6f   :  { %535 = vmatpush.msra.mxu3 %v1934_v46  ;;  %476 = vmatpush.msra.mxu0 %v1939_v48 }
  0x70   :  { %512 = vmatpush.msra.mxu2 %v1948_v51  ;;  %496 = vmatpush.msra.mxu1 %v1941_v49 }
  0x71   :  { %536 = vmatpush.msra.mxu3 %v1946_v50  ;;  %477 = vmatpush.msra.mxu0 %v1951_v52  ;;  %v153_v52 = vld [vmem:[#allocation4] sm:$0xff] }
  0x72   :  { %513 = vmatpush.msra.mxu2 %v1960_v55  ;;  %497 = vmatpush.msra.mxu1 %v1953_v53  ;;  %v154_v53 = vld [vmem:[#allocation4 + $0x8] sm:$0xff] }
  0x73   :  { %537 = vmatpush.msra.mxu3 %v1958_v54  ;;  %478 = vmatpush.msra.mxu0 %v1963_v56 }
  0x74   :  { %514 = vmatpush.msra.mxu2 %v1976_v60  ;;  %498 = vmatpush.msra.mxu1 %v1965_v57  ;;  %v156_v57 = vld [vmem:[#allocation4 + $0x18] sm:$0xff] }
  0x75   :  { %538 = vmatpush.msra.mxu3 %v1970_v58 }
  0x76   :  { %515 = vmatpush.msra.mxu2 %v1979_v61 }
  0x78   :  { %516 = vmatpush.msra.mxu2 %v1983_v62 }
  0x7a   :  { %517 = vmatpush.msra.mxu2 %v1989_v63 }
  0x7c   :  { %518 = vmatpush.msra.mxu2 %v1995_v0  ;;  %v155_v0 = vld [vmem:[#allocation4 + $0x10] sm:$0xff] }
  0xb0   :  { %v174_v50 = vpop.f32.mrf.mxu0 }
  0xb1   :  { %v237_v54 = vadd.f32 %v174_v50, %v153_v52  ;;  %v194_v49 = vpop.f32.mrf.mxu1 }
  0xb2   :  { %v238_v48 = vadd.f32 %v194_v49, %v154_v53 }
  0xb3   :  { %v1404_v46 = vmul.f32 -1.442695, %v237_v54 }
  0xb4   :  { %v1405_v56 = vmul.f32 -1.442695, %v238_v48 }
  0xb5   :  { %1436 = vpow2.f32 %v1404_v46 }
  0xb6   :  { %1438 = vpow2.f32 %v1405_v56 }
  0xb7   :  { %v234_v58 = vpop.f32.mrf.mxu3 }
  0xb8   :  { %v240_v45 = vadd.f32 %v234_v58, %v156_v57 }
  0xba   :  { %v1406_v61 = vmul.f32 -1.442695, %v240_v45 }
  0xbb   :  { %v1437_v44 = vpop.eup %1436 }
  0xbc   :  { %v1439_v62 = vpop.eup %1438  ;;  %v244_v42 = vadd.f32 1.0, %v1437_v44  ;;  %1440 = vpow2.f32 %v1406_v61 }
  0xbd   :  { %v263_v63 = vadd.f32 1.0, %v1439_v62 }
  0xbe   :  { %1442 = vrcp.f32 %v244_v42  ;;  %v256_v57 = vand.u32 2147483648, %v244_v42  ;;  %v254_v61 = vand.u32 2147483647, %v244_v42  ;;  %vm250_vm2 = vweird.f32 %v244_v42 }
  0xbf   :  { %1444 = vrcp.f32 %v263_v63  ;;  %v275_v58 = vand.u32 2147483648, %v263_v63  ;;  %v273_v41 = vand.u32 2147483647, %v263_v63  ;;  %vm269_vm3 = vweird.f32 %v263_v63 }
  0xc0   :  { %v214_v60 = vpop.f32.mrf.mxu2  ;;  %vm255_vm6 = vcmp.eq.f32.partialorder %v254_v61, 8.507059e+37  ;;  %v2776_v61 = vld [vmem:[#allocation24_spill] sm:$0xff] }
  0xc1   :  { %v239_v52 = vadd.f32 %v214_v60, %v155_v0  ;;  %vm274_vm7 = vcmp.eq.f32.partialorder %v273_v41, 8.507059e+37 }
  0xc2   :  { %v1441_v50 = vpop.eup %1440 }
  0xc3   :  { %v283_v49 = vadd.f32 1.0, %v1441_v50  ;;  %v257_v50 = vor.u32 1.1754944e-38, %v256_v57 }
  0xc4   :  { %v1443_v53 = vpop.eup %1442 }
  0xc5   :  { %v1445_v48 = vpop.eup %1444  ;;  %v246_v46 = vmul.f32 %v1443_v53, %v244_v42  ;;  %1446 = vrcp.f32 %v283_v49  ;;  %vm251_vm0 = vweird.f32 %v1443_v53  ;;  %v295_v33 = vand.u32 2147483648, %v283_v49 }
  0xc6   :  { %v265_v54 = vmul.f32 %v1445_v48, %v263_v63  ;;  %1448 = vtanh.f32 %v239_v52  ;;  %vm270_vm1 = vweird.f32 %v1445_v48  ;;  %vm252_vm4 = vmor %vm250_vm2, %vm251_vm0  ;;  %v276_v52 = vor.u32 1.1754944e-38, %v275_v58 }
  0xc7   :  { %v247_v56 = vsub.f32 1.0, %v246_v46  ;;  %vm271_vm5 = vmor %vm269_vm3, %vm270_vm1  ;;  %v83_v46 = vld [vmem:[#allocation10] sm:$0xff]  ;;  %vm289_vm9 = vweird.f32 %v283_v49  ;;  %v293_v57 = vand.u32 2147483647, %v283_v49 }
  0xc8   :  { %v266_v45 = vsub.f32 1.0, %v265_v54 }
  0xc9   :  { %v248_v44 = vmul.f32 %v1443_v53, %v247_v56  ;;  %vm294_vm11 = vcmp.eq.f32.partialorder %v293_v57, 8.507059e+37  ;;  %v2788_v57 = vld [vmem:[#allocation34_spill] sm:$0xff] }
  0xca   :  { %v267_v62 = vmul.f32 %v1445_v48, %v266_v45 }
  0xcb   :  { %v1447_v40 = vpop.eup %1446  ;;  %v249_v38 = vadd.f32 %v1443_v53, %v248_v44 }
  0xcc   :  { %v1449_v0 = vpop.eup %1448  ;;  %v285_v60 = vmul.f32 %v1447_v40, %v283_v49  ;;  %v268_v55 = vadd.f32 %v1445_v48, %v267_v62  ;;  %vm290_vm8 = vweird.f32 %v1447_v40  ;;  %v2774_v49 = vld [vmem:[#allocation22_spill] sm:$0xff]  ;;  %v2777_v62 = vld [vmem:[#allocation40_spill] sm:$0xff] }
  0xcd   :  { %v253_v54 = vsel %vm252_vm4, %v1443_v53, %v249_v38  ;;  %vm291_vm10 = vmor %vm289_vm9, %vm290_vm8  ;;  %v296_v53 = vor.u32 1.1754944e-38, %v295_v33  ;;  %v2768_v33 = vld [vmem:[#allocation18_spill] sm:$0xff] }
  0xce   :  { %v286_v56 = vsub.f32 1.0, %v285_v60  ;;  %v258_v37 = vsel %vm255_vm6, %v257_v50, %v253_v54  ;;  %v272_v36 = vsel %vm271_vm5, %v1445_v48, %v268_v55  ;;  %v2775_v48 = vld [vmem:[#allocation23_spill] sm:$0xff]  ;;  %v2779_v60 = vld [vmem:[#allocation26_spill] sm:$0xff]  ;;  %v2783_v54 = vld [vmem:[#allocation29_spill] sm:$0xff] }
  0xcf   :  { %v277_v45 = vsel %vm274_vm7, %v276_v52, %v272_v36  ;;  %v300_v34 = vmul.f32 %v1449_v0, %v258_v37  ;;  %v2770_v36 = vld [vmem:[#allocation19_spill] sm:$0xff]  ;;  %v2771_v37 = vld [vmem:[#allocation20_spill] sm:$0xff]  ;;  %v2778_v0 = vld [vmem:[#allocation25_spill] sm:$0xff] }
  0xd0   :  { %v287_v51 = vmul.f32 %v1447_v40, %v286_v56  ;;  %v299_v44 = vmul.f32 %v277_v45, %v83_v46  ;;  %v2780_v50 = vld [vmem:[#allocation27_spill] sm:$0xff]  ;;  %v2781_v52 = vld [vmem:[#allocation41_spill] sm:$0xff]  ;;  %v2782_v46 = vld [vmem:[#allocation28_spill] sm:$0xff] }
  0xd1   :  { %v2784_v56 = vld [vmem:[#allocation30_spill] sm:$0xff] }
  0xd2   :  { %v2120_v42 = vadd.f32 %v300_v34, %v299_v44  ;;  %v288_v63 = vadd.f32 %v1447_v40, %v287_v51  ;;  %v2769_v34 = vld [vmem:[#allocation32_spill] sm:$0xff]  ;;  %v2785_v45 = vld [vmem:[#allocation42_spill] sm:$0xff]  ;;  %v2786_v44 = vld [vmem:[#allocation31_spill] sm:$0xff] }
  0xd3   :  { %v2773_v51 = vld [vmem:[#allocation36_spill] sm:$0xff] }
  0xd4   :  { %1450 = vtanh.f32 %v2120_v42  ;;  %v292_v38 = vsel %vm291_vm10, %v1447_v40, %v288_v63  ;;  %v2772_v40 = vld [vmem:[#allocation21_spill] sm:$0xff] }
  0xd5   :  { %v297_v55 = vsel %vm294_vm11, %v296_v53, %v292_v38  ;;  %v2787_v63 = vld [vmem:[#allocation33_spill] sm:$0xff]  ;;  %v2789_v38 = vld [vmem:[#allocation43_spill] sm:$0xff] }
  0xd6   :  { %v2790_v53 = vld [vmem:[#allocation35_spill] sm:$0xff] }
  0xda   :  { %v1451_v58 = vpop.eup %1450 }
  0xdb   :  { %v2123_v41 = vmul.f32 %v1451_v58, %v297_v55  ;;  %v2791_v58 = vld [vmem:[#allocation37_spill] sm:$0xff]  ;;  %v2792_v55 = vld [vmem:[#allocation38_spill] sm:$0xff] }
  0xdd   :  { %326 = vmatmul.f32.vlgmr.msrb.gmra.mxu0 %v2123_v41  ;;  %346 = vmatmul.f32.vlgmr.msrb.gmra.mxu1 %v2123_v41 }
  0xde   :  { %366 = vmatmul.f32.vlgmr.msrb.gmra.mxu2 %v2123_v41  ;;  %386 = vmatmul.f32.vlgmr.msrb.gmra.mxu3 %v2123_v41 }
  0xdf   :  { %616 = vmatpush.msrb.mxu0 %v2767_v59  ;;  %636 = vmatpush.msrb.mxu1 %v1802_v1 }
  0xe0   :  { %656 = vmatpush.msrb.mxu2 %v1846_v17  ;;  %676 = vmatpush.msrb.mxu3 %v1804_v2 }
  0xe1   :  { %617 = vmatpush.msrb.mxu0 %v1808_v3  ;;  %637 = vmatpush.msrb.mxu1 %v1810_v4 }
  0xe2   :  { %657 = vmatpush.msrb.mxu2 %v1852_v19  ;;  %677 = vmatpush.msrb.mxu3 %v1812_v5 }
  0xe3   :  { %618 = vmatpush.msrb.mxu0 %v1815_v6  ;;  %638 = vmatpush.msrb.mxu1 %v1817_v7 }
  0xe4   :  { %658 = vmatpush.msrb.mxu2 %v1864_v23  ;;  %678 = vmatpush.msrb.mxu3 %v1821_v8 }
  0xe5   :  { %619 = vmatpush.msrb.mxu0 %v1824_v9  ;;  %639 = vmatpush.msrb.mxu1 %v1826_v10 }
  0xe6   :  { %659 = vmatpush.msrb.mxu2 %v1876_v27  ;;  %679 = vmatpush.msrb.mxu3 %v1830_v11 }
  0xe7   :  { %620 = vmatpush.msrb.mxu0 %v1833_v12  ;;  %640 = vmatpush.msrb.mxu1 %v1835_v13 }
  0xe8   :  { %660 = vmatpush.msrb.mxu2 %v1888_v31  ;;  %680 = vmatpush.msrb.mxu3 %v1839_v14 }
  0xe9   :  { %621 = vmatpush.msrb.mxu0 %v1842_v15  ;;  %641 = vmatpush.msrb.mxu1 %v1844_v16 }
  0xea   :  { %661 = vmatpush.msrb.mxu2 %v1900_v35  ;;  %681 = vmatpush.msrb.mxu3 %v1850_v18 }
  0xeb   :  { %622 = vmatpush.msrb.mxu0 %v1855_v20  ;;  %642 = vmatpush.msrb.mxu1 %v1857_v21 }
  0xec   :  { %662 = vmatpush.msrb.mxu2 %v1912_v39  ;;  %682 = vmatpush.msrb.mxu3 %v1862_v22 }
  0xed   :  { %623 = vmatpush.msrb.mxu0 %v1867_v24  ;;  %643 = vmatpush.msrb.mxu1 %v1869_v25 }
  0xee   :  { %663 = vmatpush.msrb.mxu2 %v1924_v43  ;;  %683 = vmatpush.msrb.mxu3 %v1874_v26 }
  0xef   :  { %624 = vmatpush.msrb.mxu0 %v1879_v28  ;;  %644 = vmatpush.msrb.mxu1 %v1881_v29 }
  0xf0   :  { %664 = vmatpush.msrb.mxu2 %v1936_v47  ;;  %684 = vmatpush.msrb.mxu3 %v1886_v30 }
  0xf1   :  { %625 = vmatpush.msrb.mxu0 %v1891_v32  ;;  %645 = vmatpush.msrb.mxu1 %v2768_v33 }
  0xf2   :  { %665 = vmatpush.msrb.mxu2 %v2769_v34  ;;  %685 = vmatpush.msrb.mxu3 %v2770_v36 }
  0xf3   :  { %626 = vmatpush.msrb.mxu0 %v2771_v37  ;;  %646 = vmatpush.msrb.mxu1 %v2772_v40 }
  0xf4   :  { %666 = vmatpush.msrb.mxu2 %v2773_v51  ;;  %686 = vmatpush.msrb.mxu3 %v2774_v49 }
  0xf5   :  { %627 = vmatpush.msrb.mxu0 %v2775_v48  ;;  %647 = vmatpush.msrb.mxu1 %v2776_v61 }
  0xf6   :  { %667 = vmatpush.msrb.mxu2 %v2777_v62  ;;  %687 = vmatpush.msrb.mxu3 %v2778_v0 }
  0xf7   :  { %628 = vmatpush.msrb.mxu0 %v2779_v60  ;;  %648 = vmatpush.msrb.mxu1 %v2780_v50 }
  0xf8   :  { %668 = vmatpush.msrb.mxu2 %v2781_v52  ;;  %688 = vmatpush.msrb.mxu3 %v2782_v46  ;;  %v2793_v46 = vld [vmem:[#allocation44_spill] sm:$0xff] }
  0xf9   :  { %629 = vmatpush.msrb.mxu0 %v2783_v54  ;;  %649 = vmatpush.msrb.mxu1 %v2784_v56  ;;  %v2794_v54 = vld [vmem:[#allocation39_spill] sm:$0xff]  ;;  %v306_v56 = vld [vmem:[#allocation4 + $0x20] sm:$0xff] }
  0xfa   :  { %669 = vmatpush.msrb.mxu2 %v2785_v45  ;;  %689 = vmatpush.msrb.mxu3 %v2786_v44  ;;  %v307_v45 = vld [vmem:[#allocation4 + $0x28] sm:$0xff] }
  0xfb   :  { %630 = vmatpush.msrb.mxu0 %v2787_v63  ;;  %650 = vmatpush.msrb.mxu1 %v2788_v57 }
  0xfc   :  { %670 = vmatpush.msrb.mxu2 %v2789_v38  ;;  %690 = vmatpush.msrb.mxu3 %v2790_v53  ;;  %v309_v38 = vld [vmem:[#allocation4 + $0x38] sm:$0xff] }
  0xfd   :  { %631 = vmatpush.msrb.mxu0 %v2791_v58  ;;  %651 = vmatpush.msrb.mxu1 %v2792_v55 }
  0xfe   :  { %671 = vmatpush.msrb.mxu2 %v2793_v46  ;;  %691 = vmatpush.msrb.mxu3 %v2794_v54  ;;  %v308_v54 = vld [vmem:[#allocation4 + $0x30] sm:$0xff] }
 0x15a   :  { %v327_v52 = vpop.f32.mrf.mxu0  ;;  %v347_v44 = vpop.f32.mrf.mxu1 }
 0x15b   :  { %v390_v50 = vadd.f32 %v327_v52, %v306_v56  ;;  %v391_v63 = vadd.f32 %v347_v44, %v307_v45 }
 0x15d   :  { %v1407_v60 = vmul.f32 -1.442695, %v390_v50  ;;  %v1408_v57 = vmul.f32 -1.442695, %v391_v63 }
 0x15f   :  { %1452 = vpow2.f32 %v1407_v60 }
 0x160   :  { %1454 = vpow2.f32 %v1408_v57 }
 0x161   :  { %v387_v53 = vpop.f32.mrf.mxu3  ;;  %v367_v48 = vpop.f32.mrf.mxu2 }
 0x162   :  { %v393_v0 = vadd.f32 %v387_v53, %v309_v38  ;;  %v392_v50 = vadd.f32 %v367_v48, %v308_v54 }
 0x164   :  { %v1409_v58 = vmul.f32 -1.442695, %v393_v0 }
 0x165   :  { %v1453_v62 = vpop.eup %1452 }
 0x166   :  { %v1455_v55 = vpop.eup %1454  ;;  %v397_v61 = vadd.f32 1.0, %v1453_v62  ;;  %1456 = vpow2.f32 %v1409_v58 }
 0x167   :  { %v416_v46 = vadd.f32 1.0, %v1455_v55 }
 0x168   :  { %1458 = vrcp.f32 %v397_v61  ;;  %v409_v0 = vand.u32 2147483648, %v397_v61  ;;  %v407_v53 = vand.u32 2147483647, %v397_v61  ;;  %vm403_vm14 = vweird.f32 %v397_v61 }
 0x169   :  { %1460 = vrcp.f32 %v416_v46  ;;  %v428_v38 = vand.u32 2147483648, %v416_v46  ;;  %v426_v55 = vand.u32 2147483647, %v416_v46  ;;  %vm422_vm15 = vweird.f32 %v416_v46 }
 0x16a   :  { %vm408_vm2 = vcmp.eq.f32.partialorder %v407_v53, 8.507059e+37 }
 0x16b   :  { %vm427_vm3 = vcmp.eq.f32.partialorder %v426_v55, 8.507059e+37 }
 0x16c   :  { %v1457_v49 = vpop.eup %1456 }
 0x16d   :  { %v436_v52 = vadd.f32 1.0, %v1457_v49  ;;  %v410_v49 = vor.u32 1.1754944e-38, %v409_v0 }
 0x16e   :  { %v1459_v56 = vpop.eup %1458 }
 0x16f   :  { %v1461_v45 = vpop.eup %1460  ;;  %v399_v60 = vmul.f32 %v1459_v56, %v397_v61  ;;  %1462 = vrcp.f32 %v436_v52  ;;  %vm404_vm12 = vweird.f32 %v1459_v56  ;;  %v448_v0 = vand.u32 2147483648, %v436_v52 }
 0x170   :  { %v418_v44 = vmul.f32 %v1461_v45, %v416_v46  ;;  %1464 = vtanh.f32 %v392_v50  ;;  %vm423_vm13 = vweird.f32 %v1461_v45  ;;  %vm405_vm0 = vmor %vm403_vm14, %vm404_vm12  ;;  %vm442_vm5 = vweird.f32 %v436_v52 }
 0x171   :  { %v400_v63 = vsub.f32 1.0, %v399_v60  ;;  %vm424_vm1 = vmor %vm422_vm15, %vm423_vm13  ;;  %v429_v60 = vor.u32 1.1754944e-38, %v428_v38  ;;  %v449_v38 = vor.u32 1.1754944e-38, %v448_v0 }
 0x172   :  { %v419_v57 = vsub.f32 1.0, %v418_v44 }
 0x173   :  { %v401_v62 = vmul.f32 %v1459_v56, %v400_v63 }
 0x174   :  { %v420_v58 = vmul.f32 %v1461_v45, %v419_v57 }
 0x175   :  { %v1463_v51 = vpop.eup %1462  ;;  %v402_v40 = vadd.f32 %v1459_v56, %v401_v62 }
 0x176   :  { %v421_v48 = vadd.f32 %v1461_v45, %v420_v58  ;;  %v438_v54 = vmul.f32 %v1463_v51, %v436_v52  ;;  %v1465_v50 = vpop.eup %1464  ;;  %vm443_vm4 = vweird.f32 %v1463_v51 }
 0x177   :  { %v406_v44 = vsel %vm405_vm0, %v1459_v56, %v402_v40  ;;  %v446_v40 = vand.u32 2147483647, %v436_v52  ;;  %vm444_vm6 = vmor %vm442_vm5, %vm443_vm4  ;;  %v461_v52 = vld [vmem:[#allocation4 + $0x50] sm:$0xff] }
 0x178   :  { %v411_v37 = vsel %vm408_vm2, %v410_v49, %v406_v44  ;;  %v425_v63 = vsel %vm424_vm1, %v1461_v45, %v421_v48  ;;  %v439_v36 = vsub.f32 1.0, %v438_v54 }
 0x179   :  { %v430_v57 = vsel %vm427_vm3, %v429_v60, %v425_v63  ;;  %v453_v34 = vmul.f32 %v1465_v50, %v411_v37  ;;  %vm447_vm7 = vcmp.eq.f32.partialorder %v446_v40, 8.507059e+37 }
 0x17a   :  { %v452_v33 = vmul.f32 %v430_v57, %v2120_v42  ;;  %v440_v62 = vmul.f32 %v1463_v51, %v439_v36 }
 0x17c   :  { %v2194_v61 = vadd.f32 %v453_v34, %v452_v33  ;;  %v441_v46 = vadd.f32 %v1463_v51, %v440_v62 }
 0x17e   :  { %1466 = vtanh.f32 %v2194_v61  ;;  %v445_v56 = vsel %vm444_vm6, %v1463_v51, %v441_v46 }
 0x17f   :  { %v450_v53 = vsel %vm447_vm7, %v449_v38, %v445_v56 }
 0x184   :  { %v1467_v45 = vpop.eup %1466 }
 0x185   :  { %v456_v58 = vmul.f32 %v1467_v45, %v450_v53 }
 0x187   :  { %479 = vmatmul.f32.vlgmr.msra.gmra.mxu0 %v456_v58  ;;  %499 = vmatmul.f32.vlgmr.msra.gmra.mxu1 %v456_v58  ;;  %v2198_v42 = vadd.f32 %v456_v58, %v2123_v41 }
 0x188   :  { %519 = vmatmul.f32.vlgmr.msra.gmra.mxu2 %v456_v58  ;;  %539 = vmatmul.f32.vlgmr.msra.gmra.mxu3 %v456_v58 }
 0x189   :  { %769 = vmatpush.msra.mxu0 %v2767_v59  ;;  %789 = vmatpush.msra.mxu1 %v1802_v1  ;;  %v2795_v1 = vld [vmem:[#allocation18_spill] sm:$0xff] }
 0x18a   :  { %809 = vmatpush.msra.mxu2 %v1846_v17  ;;  %829 = vmatpush.msra.mxu3 %v1804_v2  ;;  %v2796_v2 = vld [vmem:[#allocation32_spill] sm:$0xff]  ;;  %v2811_v17 = vld [vmem:[#allocation30_spill] sm:$0xff] }
 0x18b   :  { %770 = vmatpush.msra.mxu0 %v1808_v3  ;;  %790 = vmatpush.msra.mxu1 %v1810_v4  ;;  %v2797_v3 = vld [vmem:[#allocation19_spill] sm:$0xff]  ;;  %v2798_v4 = vld [vmem:[#allocation20_spill] sm:$0xff] }
 0x18c   :  { %810 = vmatpush.msra.mxu2 %v1852_v19  ;;  %830 = vmatpush.msra.mxu3 %v1812_v5  ;;  %v2799_v5 = vld [vmem:[#allocation21_spill] sm:$0xff]  ;;  %v2813_v19 = vld [vmem:[#allocation31_spill] sm:$0xff] }
 0x18d   :  { %771 = vmatpush.msra.mxu0 %v1815_v6  ;;  %791 = vmatpush.msra.mxu1 %v1817_v7  ;;  %v2800_v6 = vld [vmem:[#allocation36_spill] sm:$0xff]  ;;  %v2801_v7 = vld [vmem:[#allocation22_spill] sm:$0xff] }
 0x18e   :  { %811 = vmatpush.msra.mxu2 %v1864_v23  ;;  %831 = vmatpush.msra.mxu3 %v1821_v8  ;;  %v2802_v8 = vld [vmem:[#allocation23_spill] sm:$0xff] }
 0x18f   :  { %772 = vmatpush.msra.mxu0 %v1824_v9  ;;  %792 = vmatpush.msra.mxu1 %v1826_v10  ;;  %v2803_v9 = vld [vmem:[#allocation24_spill] sm:$0xff]  ;;  %v2817_v23 = vld [vmem:[#allocation35_spill] sm:$0xff] }
 0x190   :  { %812 = vmatpush.msra.mxu2 %v1876_v27  ;;  %832 = vmatpush.msra.mxu3 %v1830_v11  ;;  %v2804_v10 = vld [vmem:[#allocation40_spill] sm:$0xff]  ;;  %v2805_v11 = vld [vmem:[#allocation25_spill] sm:$0xff]  ;;  %v2821_v27 = vld [vmem:[#allocation39_spill] sm:$0xff] }
 0x191   :  { %773 = vmatpush.msra.mxu0 %v1833_v12  ;;  %793 = vmatpush.msra.mxu1 %v1835_v13  ;;  %v2806_v12 = vld [vmem:[#allocation26_spill] sm:$0xff]  ;;  %v2807_v13 = vld [vmem:[#allocation27_spill] sm:$0xff] }
 0x192   :  { %813 = vmatpush.msra.mxu2 %v1888_v31  ;;  %833 = vmatpush.msra.mxu3 %v1839_v14  ;;  %v2808_v14 = vld [vmem:[#allocation41_spill] sm:$0xff] }
 0x193   :  { %774 = vmatpush.msra.mxu0 %v1842_v15  ;;  %794 = vmatpush.msra.mxu1 %v1844_v16  ;;  %v2809_v15 = vld [vmem:[#allocation28_spill] sm:$0xff]  ;;  %v2810_v16 = vld [vmem:[#allocation29_spill] sm:$0xff] }
 0x194   :  { %814 = vmatpush.msra.mxu2 %v1900_v35  ;;  %834 = vmatpush.msra.mxu3 %v1850_v18  ;;  %v2812_v18 = vld [vmem:[#allocation42_spill] sm:$0xff] }
 0x195   :  { %775 = vmatpush.msra.mxu0 %v1855_v20  ;;  %795 = vmatpush.msra.mxu1 %v1857_v21  ;;  %v2814_v20 = vld [vmem:[#allocation33_spill] sm:$0xff]  ;;  %v2815_v21 = vld [vmem:[#allocation34_spill] sm:$0xff] }
 0x196   :  { %815 = vmatpush.msra.mxu2 %v1912_v39  ;;  %835 = vmatpush.msra.mxu3 %v1862_v22  ;;  %v2816_v22 = vld [vmem:[#allocation43_spill] sm:$0xff] }
 0x197   :  { %776 = vmatpush.msra.mxu0 %v1867_v24  ;;  %796 = vmatpush.msra.mxu1 %v1869_v25  ;;  %v2818_v24 = vld [vmem:[#allocation37_spill] sm:$0xff]  ;;  %v2819_v25 = vld [vmem:[#allocation38_spill] sm:$0xff] }
 0x198   :  { %816 = vmatpush.msra.mxu2 %v1924_v43  ;;  %836 = vmatpush.msra.mxu3 %v1874_v26  ;;  %v2820_v26 = vld [vmem:[#allocation44_spill] sm:$0xff] }
 0x199   :  { %777 = vmatpush.msra.mxu0 %v1879_v28  ;;  %797 = vmatpush.msra.mxu1 %v1881_v29  ;;  %v459_v28 = vld [vmem:[#allocation4 + $0x40] sm:$0xff]  ;;  %v460_v29 = vld [vmem:[#allocation4 + $0x48] sm:$0xff] }
 0x19a   :  { %817 = vmatpush.msra.mxu2 %v1936_v47  ;;  %837 = vmatpush.msra.mxu3 %v1886_v30  ;;  %v462_v47 = vld [vmem:[#allocation4 + $0x58] sm:$0xff] }
 0x19b   :  { %778 = vmatpush.msra.mxu0 %v1891_v32  ;;  %798 = vmatpush.msra.mxu1 %v2795_v1 }
 0x19c   :  { %818 = vmatpush.msra.mxu2 %v2796_v2  ;;  %838 = vmatpush.msra.mxu3 %v2797_v3 }
 0x19d   :  { %779 = vmatpush.msra.mxu0 %v2798_v4  ;;  %799 = vmatpush.msra.mxu1 %v2799_v5 }
 0x19e   :  { %819 = vmatpush.msra.mxu2 %v2800_v6  ;;  %839 = vmatpush.msra.mxu3 %v2801_v7 }
 0x19f   :  { %780 = vmatpush.msra.mxu0 %v2802_v8  ;;  %800 = vmatpush.msra.mxu1 %v2803_v9 }
 0x1a0   :  { %820 = vmatpush.msra.mxu2 %v2804_v10  ;;  %840 = vmatpush.msra.mxu3 %v2805_v11 }
 0x1a1   :  { %781 = vmatpush.msra.mxu0 %v2806_v12  ;;  %801 = vmatpush.msra.mxu1 %v2807_v13 }
 0x1a2   :  { %821 = vmatpush.msra.mxu2 %v2808_v14  ;;  %841 = vmatpush.msra.mxu3 %v2809_v15 }
 0x1a3   :  { %782 = vmatpush.msra.mxu0 %v2810_v16  ;;  %802 = vmatpush.msra.mxu1 %v2811_v17 }
 0x1a4   :  { %822 = vmatpush.msra.mxu2 %v2812_v18  ;;  %842 = vmatpush.msra.mxu3 %v2813_v19 }
 0x1a5   :  { %783 = vmatpush.msra.mxu0 %v2814_v20  ;;  %803 = vmatpush.msra.mxu1 %v2815_v21 }
 0x1a6   :  { %823 = vmatpush.msra.mxu2 %v2816_v22  ;;  %843 = vmatpush.msra.mxu3 %v2817_v23  ;;  %v2271_v23 = vld [vmem:[#allocation7 + $0x1e0] sm:$0xff] }
 0x1a7   :  { %784 = vmatpush.msra.mxu0 %v2818_v24  ;;  %804 = vmatpush.msra.mxu1 %v2819_v25  ;;  %v2274_v24 = vld [vmem:[#allocation7 + $0x1e8] sm:$0xff]  ;;  %v2277_v25 = vld [vmem:[#allocation7 + $0x1f0] sm:$0xff] }
 0x1a8   :  { %824 = vmatpush.msra.mxu2 %v2820_v26  ;;  %844 = vmatpush.msra.mxu3 %v2821_v27  ;;  %v2280_v26 = vld [vmem:[#allocation7 + $0x1f8] sm:$0xff]  ;;  %v2286_v27 = vld [vmem:[#allocation7 + $0x1c8] sm:$0xff] }
 0x204   :  { %v480_v30 = vpop.f32.mrf.mxu0  ;;  %v500_v31 = vpop.f32.mrf.mxu1 }
 0x205   :  { %v543_v32 = vadd.f32 %v480_v30, %v459_v28  ;;  %v544_v35 = vadd.f32 %v500_v31, %v460_v29  ;;  %v2289_v28 = vld [vmem:[#allocation7 + $0x1d0] sm:$0xff]  ;;  %v2292_v29 = vld [vmem:[#allocation7 + $0x1d8] sm:$0xff]  ;;  %v2295_v30 = vld [vmem:[#allocation7 + $0x1a0] sm:$0xff] }
 0x206   :  { %v2298_v31 = vld [vmem:[#allocation7 + $0x1a8] sm:$0xff] }
 0x207   :  { %v1410_v39 = vmul.f32 -1.442695, %v543_v32  ;;  %v1411_v43 = vmul.f32 -1.442695, %v544_v35  ;;  %v2301_v32 = vld [vmem:[#allocation7 + $0x1b0] sm:$0xff]  ;;  %v2304_v35 = vld [vmem:[#allocation7 + $0x1b8] sm:$0xff] }
 0x209   :  { %1468 = vpow2.f32 %v1410_v39  ;;  %v2307_v39 = vld [vmem:[#allocation7 + $0x180] sm:$0xff] }
 0x20a   :  { %1470 = vpow2.f32 %v1411_v43  ;;  %v2310_v43 = vld [vmem:[#allocation7 + $0x188] sm:$0xff] }
 0x20b   :  { %v540_v59 = vpop.f32.mrf.mxu3  ;;  %v520_v55 = vpop.f32.mrf.mxu2 }
 0x20c   :  { %v546_v41 = vadd.f32 %v540_v59, %v462_v47  ;;  %v545_v60 = vadd.f32 %v520_v55, %v461_v52  ;;  %v2313_v47 = vld [vmem:[#allocation7 + $0x190] sm:$0xff]  ;;  %v2316_v59 = vld [vmem:[#allocation7 + $0x198] sm:$0xff] }
 0x20d   :  { %v2337_v52 = vld [vmem:[#allocation7 + $0x150] sm:$0xff]  ;;  %v2340_v55 = vld [vmem:[#allocation7 + $0x158] sm:$0xff] }
 0x20e   :  { %v1412_v33 = vmul.f32 -1.442695, %v546_v41  ;;  %v2319_v41 = vld [vmem:[#allocation7 + $0x160] sm:$0xff] }
 0x20f   :  { %v1469_v34 = vpop.eup %1468 }
 0x210   :  { %v1471_v36 = vpop.eup %1470  ;;  %v550_v37 = vadd.f32 1.0, %v1469_v34  ;;  %1472 = vpow2.f32 %v1412_v33  ;;  %v2322_v33 = vld [vmem:[#allocation7 + $0x168] sm:$0xff]  ;;  %v2325_v34 = vld [vmem:[#allocation7 + $0x170] sm:$0xff] }
 0x211   :  { %v569_v51 = vadd.f32 1.0, %v1471_v36  ;;  %v2328_v36 = vld [vmem:[#allocation7 + $0x178] sm:$0xff] }
 0x212   :  { %1474 = vrcp.f32 %v550_v37  ;;  %v562_v46 = vand.u32 2147483648, %v550_v37  ;;  %v560_v56 = vand.u32 2147483647, %v550_v37  ;;  %vm556_vm10 = vweird.f32 %v550_v37 }
 0x213   :  { %1476 = vrcp.f32 %v569_v51  ;;  %v581_v0 = vand.u32 2147483648, %v569_v51  ;;  %v579_v45 = vand.u32 2147483647, %v569_v51  ;;  %vm575_vm11 = vweird.f32 %v569_v51 }
 0x214   :  { %v563_v1 = vor.u32 1.1754944e-38, %v562_v46  ;;  %vm561_vm14 = vcmp.eq.f32.partialorder %v560_v56, 8.507059e+37  ;;  %v2370_v46 = vld [vmem:[#allocation7 + $0xe8] sm:$0xff]  ;;  %v2379_v56 = vld [vmem:[#allocation7 + $0xc0] sm:$0xff] }
 0x215   :  { %v582_v4 = vor.u32 1.1754944e-38, %v581_v0  ;;  %vm580_vm15 = vcmp.eq.f32.partialorder %v579_v45, 8.507059e+37  ;;  %v2373_v0 = vld [vmem:[#allocation7 + $0xf0] sm:$0xff] }
 0x216   :  { %v1473_v49 = vpop.eup %1472  ;;  %v2385_v45 = vld [vmem:[#allocation7 + $0xd0] sm:$0xff] }
 0x217   :  { %v589_v48 = vadd.f32 1.0, %v1473_v49  ;;  %v2343_v49 = vld [vmem:[#allocation7 + $0x120] sm:$0xff]  ;;  %2823 = vst [vmem:[#allocation18_spill] sm:$0xff] %v2385_v45 }
 0x218   :  { %v1475_v54 = vpop.eup %1474 }
 0x219   :  { %v1477_v44 = vpop.eup %1476  ;;  %v552_v50 = vmul.f32 %v1475_v54, %v550_v37  ;;  %1478 = vrcp.f32 %v589_v48  ;;  %vm557_vm8 = vweird.f32 %v1475_v54  ;;  %v601_v16 = vand.u32 2147483648, %v589_v48  ;;  %v2331_v37 = vld [vmem:[#allocation7 + $0x140] sm:$0xff] }
 0x21a   :  { %v571_v63 = vmul.f32 %v1477_v44, %v569_v51  ;;  %1480 = vtanh.f32 %v545_v60  ;;  %vm576_vm9 = vweird.f32 %v1477_v44  ;;  %vm558_vm12 = vmor %vm556_vm10, %vm557_vm8  ;;  %vm595_vm1 = vweird.f32 %v589_v48  ;;  %v2334_v51 = vld [vmem:[#allocation7 + $0x148] sm:$0xff]  ;;  %v2352_v60 = vld [vmem:[#allocation7 + $0x138] sm:$0xff] }
 0x21b   :  { %v553_v57 = vsub.f32 1.0, %v552_v50  ;;  %vm577_vm13 = vmor %vm575_vm11, %vm576_vm9  ;;  %v599_v17 = vand.u32 2147483647, %v589_v48  ;;  %v602_v19 = vor.u32 1.1754944e-38, %v601_v16  ;;  %v2358_v50 = vld [vmem:[#allocation7 + $0x108] sm:$0xff]  ;;  %v2436_v16 = vld [vmem:[#allocation7 + $0x58] sm:$0xff] }
 0x21c   :  { %v572_v62 = vsub.f32 1.0, %v571_v63  ;;  %v2361_v63 = vld [vmem:[#allocation7 + $0x110] sm:$0xff]  ;;  %2840 = vst [vmem:[#allocation42_spill] sm:$0xff] %v2436_v16 }
 0x21d   :  { %v554_v40 = vmul.f32 %v1475_v54, %v553_v57  ;;  %vm600_vm3 = vcmp.eq.f32.partialorder %v599_v17, 8.507059e+37  ;;  %v2364_v57 = vld [vmem:[#allocation7 + $0x118] sm:$0xff]  ;;  %v2439_v17 = vld [vmem:[#allocation7 + $0x20] sm:$0xff] }
 0x21e   :  { %v573_v38 = vmul.f32 %v1477_v44, %v572_v62  ;;  %v2367_v62 = vld [vmem:[#allocation7 + $0xe0] sm:$0xff]  ;;  %2841 = vst [vmem:[#allocation31_spill] sm:$0xff] %v2439_v17 }
 0x21f   :  { %v1479_v53 = vpop.eup %1478  ;;  %v555_v58 = vadd.f32 %v1475_v54, %v554_v40  ;;  %v2376_v40 = vld [vmem:[#allocation7 + $0xf8] sm:$0xff] }
 0x220   :  { %v574_v2 = vadd.f32 %v1477_v44, %v573_v38  ;;  %v591_v3 = vmul.f32 %v1479_v53, %v589_v48  ;;  %v1481_v6 = vpop.eup %1480  ;;  %vm596_vm0 = vweird.f32 %v1479_v53  ;;  %v2346_v48 = vld [vmem:[#allocation7 + $0x128] sm:$0xff] }
 0x221   :  { %v559_v5 = vsel %vm558_vm12, %v1475_v54, %v555_v58  ;;  %vm597_vm2 = vmor %vm595_vm1, %vm596_vm0  ;;  %v2349_v54 = vld [vmem:[#allocation7 + $0x130] sm:$0xff]  ;;  %v2382_v38 = vld [vmem:[#allocation7 + $0xc8] sm:$0xff] }
 0x222   :  { %v564_v7 = vsel %vm561_vm14, %v563_v1, %v559_v5  ;;  %v578_v8 = vsel %vm577_vm13, %v1477_v44, %v574_v2  ;;  %v592_v9 = vsub.f32 1.0, %v591_v3  ;;  %v2355_v44 = vld [vmem:[#allocation7 + $0x100] sm:$0xff]  ;;  %2822 = vst [vmem:[#allocation17_spill] sm:$0xff] %v2382_v38  ;;  %v2394_v1 = vld [vmem:[#allocation7 + $0xa8] sm:$0xff]  ;;  %v2397_v2 = vld [vmem:[#allocation7 + $0xb0] sm:$0xff] }
 0x223   :  { %v583_v10 = vsel %vm580_vm15, %v582_v4, %v578_v8  ;;  %v606_v11 = vmul.f32 %v1481_v6, %v564_v7  ;;  %v2391_v58 = vld [vmem:[#allocation7 + $0xa0] sm:$0xff]  ;;  %2826 = vst [vmem:[#allocation20_spill] sm:$0xff] %v2394_v1  ;;  %v2400_v3 = vld [vmem:[#allocation7 + $0xb8] sm:$0xff]  ;;  %v2406_v5 = vld [vmem:[#allocation7 + $0x88] sm:$0xff] }
 0x224   :  { %v605_v12 = vmul.f32 %v583_v10, %v2194_v61  ;;  %v593_v13 = vmul.f32 %v1479_v53, %v592_v9  ;;  %2825 = vst [vmem:[#allocation19_spill] sm:$0xff] %v2391_v58  ;;  %v2403_v4 = vld [vmem:[#allocation7 + $0x80] sm:$0xff]  ;;  %v2409_v6 = vld [vmem:[#allocation7 + $0x90] sm:$0xff]  ;;  %v2412_v7 = vld [vmem:[#allocation7 + $0x98] sm:$0xff] }
 0x225   :  { %2827 = vst [vmem:[#allocation21_spill] sm:$0xff] %v2397_v2  ;;  %v2415_v8 = vld [vmem:[#allocation7 + $0x60] sm:$0xff]  ;;  %v2418_v9 = vld [vmem:[#allocation7 + $0x68] sm:$0xff]  ;;  %v2421_v10 = vld [vmem:[#allocation7 + $0x70] sm:$0xff] }
 0x226   :  { %v2265_v14 = vadd.f32 %v606_v11, %v605_v12  ;;  %v594_v15 = vadd.f32 %v1479_v53, %v593_v13  ;;  %2828 = vst [vmem:[#allocation36_spill] sm:$0xff] %v2400_v3  ;;  %v2424_v11 = vld [vmem:[#allocation7 + $0x78] sm:$0xff]  ;;  %v2427_v12 = vld [vmem:[#allocation7 + $0x40] sm:$0xff]  ;;  %v2430_v13 = vld [vmem:[#allocation7 + $0x48] sm:$0xff] }
 0x227   :  { %2829 = vst [vmem:[#allocation22_spill] sm:$0xff] %v2403_v4 }
 0x228   :  { %1482 = vtanh.f32 %v2265_v14  ;;  %v598_v18 = vsel %vm597_vm2, %v1479_v53, %v594_v15  ;;  %v2388_v53 = vld [vmem:[#allocation7 + $0xd8] sm:$0xff]  ;;  %2830 = vst [vmem:[#allocation23_spill] sm:$0xff] %v2406_v5  ;;  %v2433_v15 = vld [vmem:[#allocation7 + $0x50] sm:$0xff] }
 0x229   :  { %v603_v21 = vsel %vm600_vm3, %v602_v19, %v598_v18  ;;  %2824 = vst [vmem:[#allocation32_spill] sm:$0xff] %v2388_v53  ;;  %v2442_v18 = vld [vmem:[#allocation7 + $0x28] sm:$0xff]  ;;  %v2445_v19 = vld [vmem:[#allocation7 + $0x30] sm:$0xff] }
 0x22a   :  { %2831 = vst [vmem:[#allocation24_spill] sm:$0xff] %v2409_v6 }
 0x22b   :  { %2832 = vst [vmem:[#allocation40_spill] sm:$0xff] %v2412_v7 }
 0x22c   :  { %2833 = vst [vmem:[#allocation25_spill] sm:$0xff] %v2415_v8 }
 0x22d   :  { %2834 = vst [vmem:[#allocation26_spill] sm:$0xff] %v2418_v9 }
 0x22e   :  { %v1483_v20 = vpop.eup %1482  ;;  %2835 = vst [vmem:[#allocation27_spill] sm:$0xff] %v2421_v10 }
 0x22f   :  { %v609_v22 = vmul.f32 %v1483_v20, %v603_v21  ;;  %2836 = vst [vmem:[#allocation41_spill] sm:$0xff] %v2424_v11  ;;  %v2448_v20 = vld [vmem:[#allocation7 + $0x38] sm:$0xff]  ;;  %v2451_v21 = vld [vmem:[#allocation7] sm:$0xff] }
 0x230   :  { %2837 = vst [vmem:[#allocation28_spill] sm:$0xff] %v2427_v12 }
 0x231   :  { %632 = vmatmul.f32.vlgmr.msrb.gmra.mxu0 %v609_v22  ;;  %652 = vmatmul.f32.vlgmr.msrb.gmra.mxu1 %v609_v22  ;;  %v2269_v61 = vadd.f32 %v609_v22, %v2198_v42  ;;  %v2283_v42 = vld [vmem:[#allocation7 + $0x1c0] sm:$0xff]  ;;  %2838 = vst [vmem:[#allocation29_spill] sm:$0xff] %v2430_v13 }
 0x232   :  { %672 = vmatmul.f32.vlgmr.msrb.gmra.mxu2 %v609_v22  ;;  %692 = vmatmul.f32.vlgmr.msrb.gmra.mxu3 %v609_v22  ;;  %2839 = vst [vmem:[#allocation30_spill] sm:$0xff] %v2433_v15  ;;  %v2454_v22 = vld [vmem:[#allocation7 + $0x8] sm:$0xff] }
 0x233   :  { %922 = vmatpush.msrb.mxu0 %v2271_v23  ;;  %942 = vmatpush.msrb.mxu1 %v2274_v24  ;;  %2842 = vst [vmem:[#allocation33_spill] sm:$0xff] %v2442_v18 }
 0x234   :  { %962 = vmatpush.msrb.mxu2 %v2277_v25  ;;  %982 = vmatpush.msrb.mxu3 %v2280_v26  ;;  %2843 = vst [vmem:[#allocation34_spill] sm:$0xff] %v2445_v19 }
 0x235   :  { %923 = vmatpush.msrb.mxu0 %v2283_v42  ;;  %943 = vmatpush.msrb.mxu1 %v2286_v27  ;;  %2844 = vst [vmem:[#allocation43_spill] sm:$0xff] %v2448_v20 }
 0x236   :  { %963 = vmatpush.msrb.mxu2 %v2289_v28  ;;  %983 = vmatpush.msrb.mxu3 %v2292_v29  ;;  %2845 = vst [vmem:[#allocation35_spill] sm:$0xff] %v2451_v21 }
 0x237   :  { %924 = vmatpush.msrb.mxu0 %v2295_v30  ;;  %944 = vmatpush.msrb.mxu1 %v2298_v31  ;;  %2846 = vst [vmem:[#allocation37_spill] sm:$0xff] %v2454_v22 }
 0x238   :  { %964 = vmatpush.msrb.mxu2 %v2301_v32  ;;  %984 = vmatpush.msrb.mxu3 %v2304_v35 }
 0x239   :  { %925 = vmatpush.msrb.mxu0 %v2307_v39  ;;  %945 = vmatpush.msrb.mxu1 %v2310_v43 }
 0x23a   :  { %965 = vmatpush.msrb.mxu2 %v2313_v47  ;;  %985 = vmatpush.msrb.mxu3 %v2316_v59 }
 0x23b   :  { %926 = vmatpush.msrb.mxu0 %v2319_v41  ;;  %946 = vmatpush.msrb.mxu1 %v2322_v33 }
 0x23c   :  { %966 = vmatpush.msrb.mxu2 %v2325_v34  ;;  %986 = vmatpush.msrb.mxu3 %v2328_v36 }
 0x23d   :  { %927 = vmatpush.msrb.mxu0 %v2331_v37  ;;  %947 = vmatpush.msrb.mxu1 %v2334_v51 }
 0x23e   :  { %967 = vmatpush.msrb.mxu2 %v2337_v52  ;;  %987 = vmatpush.msrb.mxu3 %v2340_v55 }
 0x23f   :  { %928 = vmatpush.msrb.mxu0 %v2343_v49  ;;  %948 = vmatpush.msrb.mxu1 %v2346_v48 }
 0x240   :  { %968 = vmatpush.msrb.mxu2 %v2349_v54  ;;  %988 = vmatpush.msrb.mxu3 %v2352_v60 }
 0x241   :  { %929 = vmatpush.msrb.mxu0 %v2355_v44  ;;  %949 = vmatpush.msrb.mxu1 %v2358_v50 }
 0x242   :  { %969 = vmatpush.msrb.mxu2 %v2361_v63  ;;  %989 = vmatpush.msrb.mxu3 %v2364_v57 }
 0x243   :  { %930 = vmatpush.msrb.mxu0 %v2367_v62  ;;  %950 = vmatpush.msrb.mxu1 %v2370_v46 }
 0x244   :  { %970 = vmatpush.msrb.mxu2 %v2373_v0  ;;  %990 = vmatpush.msrb.mxu3 %v2376_v40 }
 0x245   :  { %931 = vmatpush.msrb.mxu0 %v2379_v56  ;;  %951 = vmatpush.msrb.mxu1 %v2382_v38 }
 0x246   :  { %971 = vmatpush.msrb.mxu2 %v2385_v45  ;;  %991 = vmatpush.msrb.mxu3 %v2388_v53 }
 0x247   :  { %932 = vmatpush.msrb.mxu0 %v2391_v58  ;;  %952 = vmatpush.msrb.mxu1 %v2394_v1 }
 0x248   :  { %972 = vmatpush.msrb.mxu2 %v2397_v2  ;;  %992 = vmatpush.msrb.mxu3 %v2400_v3 }
 0x249   :  { %933 = vmatpush.msrb.mxu0 %v2403_v4  ;;  %953 = vmatpush.msrb.mxu1 %v2406_v5 }
 0x24a   :  { %973 = vmatpush.msrb.mxu2 %v2409_v6  ;;  %993 = vmatpush.msrb.mxu3 %v2412_v7 }
 0x24b   :  { %934 = vmatpush.msrb.mxu0 %v2415_v8  ;;  %954 = vmatpush.msrb.mxu1 %v2418_v9 }
 0x24c   :  { %974 = vmatpush.msrb.mxu2 %v2421_v10  ;;  %994 = vmatpush.msrb.mxu3 %v2424_v11  ;;  %v615_v10 = vld [vmem:[#allocation4 + $0x78] sm:$0xff] }
 0x24d   :  { %935 = vmatpush.msrb.mxu0 %v2427_v12  ;;  %955 = vmatpush.msrb.mxu1 %v2430_v13 }
 0x24e   :  { %975 = vmatpush.msrb.mxu2 %v2433_v15  ;;  %995 = vmatpush.msrb.mxu3 %v2436_v16  ;;  %v613_v16 = vld [vmem:[#allocation4 + $0x68] sm:$0xff] }
 0x24f   :  { %936 = vmatpush.msrb.mxu0 %v2439_v17  ;;  %956 = vmatpush.msrb.mxu1 %v2442_v18  ;;  %v2457_v17 = vld [vmem:[#allocation7 + $0x10] sm:$0xff]  ;;  %v2460_v18 = vld [vmem:[#allocation7 + $0x18] sm:$0xff] }
 0x250   :  { %976 = vmatpush.msrb.mxu2 %v2445_v19  ;;  %996 = vmatpush.msrb.mxu3 %v2448_v20  ;;  %2847 = vst [vmem:[#allocation38_spill] sm:$0xff] %v2457_v17  ;;  %v612_v19 = vld [vmem:[#allocation4 + $0x60] sm:$0xff] }
 0x251   :  { %937 = vmatpush.msrb.mxu0 %v2451_v21  ;;  %957 = vmatpush.msrb.mxu1 %v2454_v22  ;;  %2848 = vst [vmem:[#allocation44_spill] sm:$0xff] %v2460_v18 }
 0x252   :  { %977 = vmatpush.msrb.mxu2 %v2457_v17  ;;  %997 = vmatpush.msrb.mxu3 %v2460_v18  ;;  %v614_v18 = vld [vmem:[#allocation4 + $0x70] sm:$0xff] }
 0x2ae   :  { %v633_v15 = vpop.f32.mrf.mxu0  ;;  %v653_v20 = vpop.f32.mrf.mxu1 }
 0x2af   :  { %v696_v13 = vadd.f32 %v633_v15, %v612_v19  ;;  %v697_v12 = vadd.f32 %v653_v20, %v613_v16 }
 0x2b1   :  { %v1413_v11 = vmul.f32 -1.442695, %v696_v13  ;;  %v1414_v21 = vmul.f32 -1.442695, %v697_v12 }
 0x2b3   :  { %1484 = vpow2.f32 %v1413_v11 }
 0x2b4   :  { %1486 = vpow2.f32 %v1414_v21 }
 0x2b5   :  { %v693_v22 = vpop.f32.mrf.mxu3  ;;  %v673_v4 = vpop.f32.mrf.mxu2 }
 0x2b6   :  { %v699_v9 = vadd.f32 %v693_v22, %v615_v10  ;;  %v698_v13 = vadd.f32 %v673_v4, %v614_v18 }
 0x2b8   :  { %v1415_v8 = vmul.f32 -1.442695, %v699_v9 }
 0x2b9   :  { %v1485_v7 = vpop.eup %1484 }
 0x2ba   :  { %v1487_v17 = vpop.eup %1486  ;;  %v703_v6 = vadd.f32 1.0, %v1485_v7  ;;  %1488 = vpow2.f32 %v1415_v8 }
 0x2bb   :  { %v722_v5 = vadd.f32 1.0, %v1487_v17 }
 0x2bc   :  { %1490 = vrcp.f32 %v703_v6  ;;  %v715_v9 = vand.u32 2147483648, %v703_v6  ;;  %v713_v8 = vand.u32 2147483647, %v703_v6  ;;  %vm709_vm6 = vweird.f32 %v703_v6 }
 0x2bd   :  { %1492 = vrcp.f32 %v722_v5  ;;  %v734_v21 = vand.u32 2147483648, %v722_v5  ;;  %v732_v22 = vand.u32 2147483647, %v722_v5  ;;  %vm728_vm7 = vweird.f32 %v722_v5 }
 0x2be   :  { %vm714_vm10 = vcmp.eq.f32.partialorder %v713_v8, 8.507059e+37 }
 0x2bf   :  { %vm733_vm11 = vcmp.eq.f32.partialorder %v732_v22, 8.507059e+37  ;;  %v2856_v22 = vld [vmem:[#allocation22_spill] sm:$0xff] }
 0x2c0   :  { %v1489_v3 = vpop.eup %1488 }
 0x2c1   :  { %v742_v15 = vadd.f32 1.0, %v1489_v3  ;;  %v716_v3 = vor.u32 1.1754944e-38, %v715_v9 }
 0x2c2   :  { %v1491_v16 = vpop.eup %1490 }
 0x2c3   :  { %v1493_v12 = vpop.eup %1492  ;;  %v705_v11 = vmul.f32 %v1491_v16, %v703_v6  ;;  %1494 = vrcp.f32 %v742_v15  ;;  %vm710_vm4 = vweird.f32 %v1491_v16  ;;  %v754_v9 = vand.u32 2147483648, %v742_v15 }
 0x2c4   :  { %v724_v19 = vmul.f32 %v1493_v12, %v722_v5  ;;  %1496 = vtanh.f32 %v698_v13  ;;  %vm729_vm5 = vweird.f32 %v1493_v12  ;;  %vm711_vm8 = vmor %vm709_vm6, %vm710_vm4  ;;  %vm748_vm13 = vweird.f32 %v742_v15 }
 0x2c5   :  { %v706_v20 = vsub.f32 1.0, %v705_v11  ;;  %vm730_vm9 = vmor %vm728_vm7, %vm729_vm5  ;;  %v735_v11 = vor.u32 1.1754944e-38, %v734_v21  ;;  %v755_v21 = vor.u32 1.1754944e-38, %v754_v9  ;;  %v2867_v9 = vld [vmem:[#allocation42_spill] sm:$0xff] }
 0x2c6   :  { %v725_v10 = vsub.f32 1.0, %v724_v19 }
 0x2c7   :  { %v707_v7 = vmul.f32 %v1491_v16, %v706_v20 }
 0x2c8   :  { %v726_v17 = vmul.f32 %v1493_v12, %v725_v10 }
 0x2c9   :  { %v1495_v2 = vpop.eup %1494  ;;  %v708_v1 = vadd.f32 %v1491_v16, %v707_v7 }
 0x2ca   :  { %v727_v4 = vadd.f32 %v1493_v12, %v726_v17  ;;  %v744_v18 = vmul.f32 %v1495_v2, %v742_v15  ;;  %v1497_v13 = vpop.eup %1496  ;;  %vm749_vm12 = vweird.f32 %v1495_v2 }
 0x2cb   :  { %v712_v19 = vsel %vm711_vm8, %v1491_v16, %v708_v1  ;;  %v752_v1 = vand.u32 2147483647, %v742_v15  ;;  %vm750_vm14 = vmor %vm748_vm13, %vm749_vm12  ;;  %v2855_v15 = vld [vmem:[#allocation36_spill] sm:$0xff] }
 0x2cc   :  { %v717_v58 = vsel %vm714_vm10, %v716_v3, %v712_v19  ;;  %v731_v20 = vsel %vm730_vm9, %v1493_v12, %v727_v4  ;;  %v745_v53 = vsub.f32 1.0, %v744_v18  ;;  %v2857_v3 = vld [vmem:[#allocation23_spill] sm:$0xff]  ;;  %v2858_v4 = vld [vmem:[#allocation24_spill] sm:$0xff]  ;;  %v2861_v19 = vld [vmem:[#allocation26_spill] sm:$0xff] }
 0x2cd   :  { %v736_v10 = vsel %vm733_vm11, %v735_v11, %v731_v20  ;;  %v759_v45 = vmul.f32 %v1497_v13, %v717_v58  ;;  %vm753_vm15 = vcmp.eq.f32.partialorder %v752_v1, 8.507059e+37  ;;  %v2853_v58 = vld [vmem:[#allocation20_spill] sm:$0xff]  ;;  %v2860_v11 = vld [vmem:[#allocation25_spill] sm:$0xff]  ;;  %v2862_v13 = vld [vmem:[#allocation27_spill] sm:$0xff] }
 0x2ce   :  { %v758_v38 = vmul.f32 %v736_v10, %v2265_v14  ;;  %v746_v7 = vmul.f32 %v1495_v2, %v745_v53  ;;  %v2852_v53 = vld [vmem:[#allocation19_spill] sm:$0xff]  ;;  %v2859_v18 = vld [vmem:[#allocation40_spill] sm:$0xff]  ;;  %v2863_v20 = vld [vmem:[#allocation41_spill] sm:$0xff] }
 0x2cf   :  { %v2864_v10 = vld [vmem:[#allocation28_spill] sm:$0xff]  ;;  %v2868_v1 = vld [vmem:[#allocation31_spill] sm:$0xff] }
 0x2d0   :  { %v2464_v6 = vadd.f32 %v759_v45, %v758_v38  ;;  %v747_v5 = vadd.f32 %v1495_v2, %v746_v7  ;;  %v2850_v38 = vld [vmem:[#allocation18_spill] sm:$0xff]  ;;  %v2851_v45 = vld [vmem:[#allocation32_spill] sm:$0xff]  ;;  %v2865_v7 = vld [vmem:[#allocation29_spill] sm:$0xff] }
 0x2d2   :  { %1498 = vtanh.f32 %v2464_v6  ;;  %v751_v16 = vsel %vm750_vm14, %v1495_v2, %v747_v5  ;;  %v2854_v2 = vld [vmem:[#allocation21_spill] sm:$0xff]  ;;  %v2866_v5 = vld [vmem:[#allocation30_spill] sm:$0xff] }
 0x2d3   :  { %v756_v8 = vsel %vm753_vm15, %v755_v21, %v751_v16  ;;  %v2869_v16 = vld [vmem:[#allocation33_spill] sm:$0xff]  ;;  %v2870_v21 = vld [vmem:[#allocation34_spill] sm:$0xff] }
 0x2d8   :  { %v1499_v12 = vpop.eup %1498 }
 0x2d9   :  { %v762_v17 = vmul.f32 %v1499_v12, %v756_v8  ;;  %v2871_v12 = vld [vmem:[#allocation43_spill] sm:$0xff] }
 0x2da   :  { %v2872_v8 = vld [vmem:[#allocation35_spill] sm:$0xff] }
 0x2db   :  { %785 = vmatmul.f32.vlgmr.msra.gmra.mxu0 %v762_v17  ;;  %805 = vmatmul.f32.vlgmr.msra.gmra.mxu1 %v762_v17  ;;  %v2468_v14 = vadd.f32 %v762_v17, %v2269_v61  ;;  %v2849_v61 = vld [vmem:[#allocation17_spill] sm:$0xff] }
 0x2dc   :  { %825 = vmatmul.f32.vlgmr.msra.gmra.mxu2 %v762_v17  ;;  %845 = vmatmul.f32.vlgmr.msra.gmra.mxu3 %v762_v17  ;;  %v2873_v17 = vld [vmem:[#allocation37_spill] sm:$0xff] }
 0x2dd   :  { %1075 = vmatpush.msra.mxu0 %v2271_v23  ;;  %1095 = vmatpush.msra.mxu1 %v2274_v24 }
 0x2de   :  { %1115 = vmatpush.msra.mxu2 %v2277_v25  ;;  %1135 = vmatpush.msra.mxu3 %v2280_v26 }
 0x2df   :  { %1076 = vmatpush.msra.mxu0 %v2283_v42  ;;  %1096 = vmatpush.msra.mxu1 %v2286_v27 }
 0x2e0   :  { %1116 = vmatpush.msra.mxu2 %v2289_v28  ;;  %1136 = vmatpush.msra.mxu3 %v2292_v29 }
 0x2e1   :  { %1077 = vmatpush.msra.mxu0 %v2295_v30  ;;  %1097 = vmatpush.msra.mxu1 %v2298_v31 }
 0x2e2   :  { %1117 = vmatpush.msra.mxu2 %v2301_v32  ;;  %1137 = vmatpush.msra.mxu3 %v2304_v35 }
 0x2e3   :  { %1078 = vmatpush.msra.mxu0 %v2307_v39  ;;  %1098 = vmatpush.msra.mxu1 %v2310_v43 }
 0x2e4   :  { %1118 = vmatpush.msra.mxu2 %v2313_v47  ;;  %1138 = vmatpush.msra.mxu3 %v2316_v59 }
 0x2e5   :  { %1079 = vmatpush.msra.mxu0 %v2319_v41  ;;  %1099 = vmatpush.msra.mxu1 %v2322_v33 }
 0x2e6   :  { %1119 = vmatpush.msra.mxu2 %v2325_v34  ;;  %1139 = vmatpush.msra.mxu3 %v2328_v36 }
 0x2e7   :  { %1080 = vmatpush.msra.mxu0 %v2331_v37  ;;  %1100 = vmatpush.msra.mxu1 %v2334_v51 }
 0x2e8   :  { %1120 = vmatpush.msra.mxu2 %v2337_v52  ;;  %1140 = vmatpush.msra.mxu3 %v2340_v55 }
 0x2e9   :  { %1081 = vmatpush.msra.mxu0 %v2343_v49  ;;  %1101 = vmatpush.msra.mxu1 %v2346_v48 }
 0x2ea   :  { %1121 = vmatpush.msra.mxu2 %v2349_v54  ;;  %1141 = vmatpush.msra.mxu3 %v2352_v60 }
 0x2eb   :  { %1082 = vmatpush.msra.mxu0 %v2355_v44  ;;  %1102 = vmatpush.msra.mxu1 %v2358_v50 }
 0x2ec   :  { %1122 = vmatpush.msra.mxu2 %v2361_v63  ;;  %1142 = vmatpush.msra.mxu3 %v2364_v57 }
 0x2ed   :  { %1083 = vmatpush.msra.mxu0 %v2367_v62  ;;  %1103 = vmatpush.msra.mxu1 %v2370_v46 }
 0x2ee   :  { %1123 = vmatpush.msra.mxu2 %v2373_v0  ;;  %1143 = vmatpush.msra.mxu3 %v2376_v40 }
 0x2ef   :  { %1084 = vmatpush.msra.mxu0 %v2379_v56  ;;  %1104 = vmatpush.msra.mxu1 %v2849_v61 }
 0x2f0   :  { %1124 = vmatpush.msra.mxu2 %v2850_v38  ;;  %1144 = vmatpush.msra.mxu3 %v2851_v45 }
 0x2f1   :  { %1085 = vmatpush.msra.mxu0 %v2852_v53  ;;  %1105 = vmatpush.msra.mxu1 %v2853_v58 }
 0x2f2   :  { %1125 = vmatpush.msra.mxu2 %v2854_v2  ;;  %1145 = vmatpush.msra.mxu3 %v2855_v15 }
 0x2f3   :  { %1086 = vmatpush.msra.mxu0 %v2856_v22  ;;  %1106 = vmatpush.msra.mxu1 %v2857_v3 }
 0x2f4   :  { %1126 = vmatpush.msra.mxu2 %v2858_v4  ;;  %1146 = vmatpush.msra.mxu3 %v2859_v18 }
 0x2f5   :  { %1087 = vmatpush.msra.mxu0 %v2860_v11  ;;  %1107 = vmatpush.msra.mxu1 %v2861_v19 }
 0x2f6   :  { %1127 = vmatpush.msra.mxu2 %v2862_v13  ;;  %1147 = vmatpush.msra.mxu3 %v2863_v20  ;;  %v2874_v20 = vld [vmem:[#allocation38_spill] sm:$0xff] }
 0x2f7   :  { %1088 = vmatpush.msra.mxu0 %v2864_v10  ;;  %1108 = vmatpush.msra.mxu1 %v2865_v7  ;;  %v2875_v10 = vld [vmem:[#allocation44_spill] sm:$0xff]  ;;  %v765_v7 = vld [vmem:[#allocation4 + $0x80] sm:$0xff] }
 0x2f8   :  { %1128 = vmatpush.msra.mxu2 %v2866_v5  ;;  %1148 = vmatpush.msra.mxu3 %v2867_v9  ;;  %v766_v5 = vld [vmem:[#allocation4 + $0x88] sm:$0xff] }
 0x2f9   :  { %1089 = vmatpush.msra.mxu0 %v2868_v1  ;;  %1109 = vmatpush.msra.mxu1 %v2869_v16 }
 0x2fa   :  { %1129 = vmatpush.msra.mxu2 %v2870_v21  ;;  %1149 = vmatpush.msra.mxu3 %v2871_v12  ;;  %v768_v21 = vld [vmem:[#allocation4 + $0x98] sm:$0xff] }
 0x2fb   :  { %1090 = vmatpush.msra.mxu0 %v2872_v8  ;;  %1110 = vmatpush.msra.mxu1 %v2873_v17 }
 0x2fc   :  { %1130 = vmatpush.msra.mxu2 %v2874_v20  ;;  %1150 = vmatpush.msra.mxu3 %v2875_v10  ;;  %v767_v10 = vld [vmem:[#allocation4 + $0x90] sm:$0xff] }
 0x358   :  { %v786_v13 = vpop.f32.mrf.mxu0  ;;  %v806_v9 = vpop.f32.mrf.mxu1 }
 0x359   :  { %v849_v19 = vadd.f32 %v786_v13, %v765_v7  ;;  %v850_v1 = vadd.f32 %v806_v9, %v766_v5 }
 0x35b   :  { %v1416_v11 = vmul.f32 -1.442695, %v849_v19  ;;  %v1417_v16 = vmul.f32 -1.442695, %v850_v1 }
 0x35d   :  { %1500 = vpow2.f32 %v1416_v11 }
 0x35e   :  { %1502 = vpow2.f32 %v1417_v16 }
 0x35f   :  { %v846_v12 = vpop.f32.mrf.mxu3  ;;  %v826_v22 = vpop.f32.mrf.mxu2 }
 0x360   :  { %v852_v18 = vadd.f32 %v846_v12, %v768_v21  ;;  %v851_v19 = vadd.f32 %v826_v22, %v767_v10 }
 0x362   :  { %v1418_v8 = vmul.f32 -1.442695, %v852_v18 }
 0x363   :  { %v1501_v4 = vpop.eup %1500 }
 0x364   :  { %v1503_v17 = vpop.eup %1502  ;;  %v856_v3 = vadd.f32 1.0, %v1501_v4  ;;  %1504 = vpow2.f32 %v1418_v8 }
 0x365   :  { %v875_v20 = vadd.f32 1.0, %v1503_v17 }
 0x366   :  { %1506 = vrcp.f32 %v856_v3  ;;  %v868_v18 = vand.u32 2147483648, %v856_v3  ;;  %v866_v12 = vand.u32 2147483647, %v856_v3  ;;  %vm862_vm2 = vweird.f32 %v856_v3 }
 0x367   :  { %1508 = vrcp.f32 %v875_v20  ;;  %v887_v21 = vand.u32 2147483648, %v875_v20  ;;  %v885_v17 = vand.u32 2147483647, %v875_v20  ;;  %vm881_vm3 = vweird.f32 %v875_v20 }
 0x368   :  { %vm867_vm6 = vcmp.eq.f32.partialorder %v866_v12, 8.507059e+37 }
 0x369   :  { %vm886_vm7 = vcmp.eq.f32.partialorder %v885_v17, 8.507059e+37 }
 0x36a   :  { %v1505_v15 = vpop.eup %1504 }
 0x36b   :  { %v895_v13 = vadd.f32 1.0, %v1505_v15  ;;  %v869_v15 = vor.u32 1.1754944e-38, %v868_v18 }
 0x36c   :  { %v1507_v7 = vpop.eup %1506 }
 0x36d   :  { %v1509_v5 = vpop.eup %1508  ;;  %v858_v11 = vmul.f32 %v1507_v7, %v856_v3  ;;  %1510 = vrcp.f32 %v895_v13  ;;  %vm863_vm0 = vweird.f32 %v1507_v7  ;;  %v907_v18 = vand.u32 2147483648, %v895_v13 }
 0x36e   :  { %v877_v9 = vmul.f32 %v1509_v5, %v875_v20  ;;  %1512 = vtanh.f32 %v851_v19  ;;  %vm882_vm1 = vweird.f32 %v1509_v5  ;;  %vm864_vm4 = vmor %vm862_vm2, %vm863_vm0  ;;  %vm901_vm9 = vweird.f32 %v895_v13 }
 0x36f   :  { %v859_v1 = vsub.f32 1.0, %v858_v11  ;;  %vm883_vm5 = vmor %vm881_vm3, %vm882_vm1  ;;  %v888_v11 = vor.u32 1.1754944e-38, %v887_v21  ;;  %v908_v21 = vor.u32 1.1754944e-38, %v907_v18 }
 0x370   :  { %v878_v16 = vsub.f32 1.0, %v877_v9 }
 0x371   :  { %v860_v4 = vmul.f32 %v1507_v7, %v859_v1 }
 0x372   :  { %v879_v8 = vmul.f32 %v1509_v5, %v878_v16 }
 0x373   :  { %v1511_v2 = vpop.eup %1510  ;;  %v861_v58 = vadd.f32 %v1507_v7, %v860_v4 }
 0x374   :  { %v880_v22 = vadd.f32 %v1509_v5, %v879_v8  ;;  %v897_v10 = vmul.f32 %v1511_v2, %v895_v13  ;;  %v1513_v19 = vpop.eup %1512  ;;  %vm902_vm8 = vweird.f32 %v1511_v2 }
 0x375   :  { %v865_v9 = vsel %vm864_vm4, %v1507_v7, %v861_v58  ;;  %v905_v58 = vand.u32 2147483647, %v895_v13  ;;  %vm903_vm10 = vmor %vm901_vm9, %vm902_vm8  ;;  %v920_v13 = vld [vmem:[#allocation4 + $0xb0] sm:$0xff] }
 0x376   :  { %v870_v53 = vsel %vm867_vm6, %v869_v15, %v865_v9  ;;  %v884_v1 = vsel %vm883_vm5, %v1509_v5, %v880_v22  ;;  %v898_v45 = vsub.f32 1.0, %v897_v10 }
 0x377   :  { %v889_v16 = vsel %vm886_vm7, %v888_v11, %v884_v1  ;;  %v912_v38 = vmul.f32 %v1513_v19, %v870_v53  ;;  %vm906_vm11 = vcmp.eq.f32.partialorder %v905_v58, 8.507059e+37 }
 0x378   :  { %v911_v61 = vmul.f32 %v889_v16, %v2464_v6  ;;  %v899_v4 = vmul.f32 %v1511_v2, %v898_v45 }
 0x37a   :  { %v2535_v3 = vadd.f32 %v912_v38, %v911_v61  ;;  %v900_v20 = vadd.f32 %v1511_v2, %v899_v4 }
 0x37c   :  { %1514 = vtanh.f32 %v2535_v3  ;;  %v904_v7 = vsel %vm903_vm10, %v1511_v2, %v900_v20 }
 0x37d   :  { %v909_v12 = vsel %vm906_vm11, %v908_v21, %v904_v7 }
 0x382   :  { %v1515_v5 = vpop.eup %1514 }
 0x383   :  { %v915_v8 = vmul.f32 %v1515_v5, %v909_v12 }
 0x385   :  { %938 = vmatmul.f32.vlgmr.msrb.gmra.mxu0 %v915_v8  ;;  %958 = vmatmul.f32.vlgmr.msrb.gmra.mxu1 %v915_v8  ;;  %v2539_v6 = vadd.f32 %v915_v8, %v2468_v14 }
 0x386   :  { %978 = vmatmul.f32.vlgmr.msrb.gmra.mxu2 %v915_v8  ;;  %998 = vmatmul.f32.vlgmr.msrb.gmra.mxu3 %v915_v8 }
 0x387   :  { %1228 = vmatpush.msrb.mxu0 %v2271_v23  ;;  %1248 = vmatpush.msrb.mxu1 %v2274_v24  ;;  %v2876_v23 = vld [vmem:[#allocation17_spill] sm:$0xff]  ;;  %v2877_v24 = vld [vmem:[#allocation18_spill] sm:$0xff] }
 0x388   :  { %1268 = vmatpush.msrb.mxu2 %v2277_v25  ;;  %1288 = vmatpush.msrb.mxu3 %v2280_v26  ;;  %v2878_v25 = vld [vmem:[#allocation32_spill] sm:$0xff]  ;;  %v2879_v26 = vld [vmem:[#allocation19_spill] sm:$0xff] }
 0x389   :  { %1229 = vmatpush.msrb.mxu0 %v2283_v42  ;;  %1249 = vmatpush.msrb.mxu1 %v2286_v27  ;;  %v2880_v42 = vld [vmem:[#allocation20_spill] sm:$0xff]  ;;  %v2881_v27 = vld [vmem:[#allocation21_spill] sm:$0xff] }
 0x38a   :  { %1269 = vmatpush.msrb.mxu2 %v2289_v28  ;;  %1289 = vmatpush.msrb.mxu3 %v2292_v29  ;;  %v2882_v28 = vld [vmem:[#allocation36_spill] sm:$0xff]  ;;  %v2883_v29 = vld [vmem:[#allocation22_spill] sm:$0xff] }
 0x38b   :  { %1230 = vmatpush.msrb.mxu0 %v2295_v30  ;;  %1250 = vmatpush.msrb.mxu1 %v2298_v31  ;;  %v2884_v30 = vld [vmem:[#allocation23_spill] sm:$0xff]  ;;  %v2885_v31 = vld [vmem:[#allocation24_spill] sm:$0xff] }
 0x38c   :  { %1270 = vmatpush.msrb.mxu2 %v2301_v32  ;;  %1290 = vmatpush.msrb.mxu3 %v2304_v35  ;;  %v2886_v32 = vld [vmem:[#allocation40_spill] sm:$0xff]  ;;  %v2887_v35 = vld [vmem:[#allocation25_spill] sm:$0xff] }
 0x38d   :  { %1231 = vmatpush.msrb.mxu0 %v2307_v39  ;;  %1251 = vmatpush.msrb.mxu1 %v2310_v43  ;;  %v2888_v39 = vld [vmem:[#allocation26_spill] sm:$0xff]  ;;  %v2889_v43 = vld [vmem:[#allocation27_spill] sm:$0xff] }
 0x38e   :  { %1271 = vmatpush.msrb.mxu2 %v2313_v47  ;;  %1291 = vmatpush.msrb.mxu3 %v2316_v59  ;;  %v2890_v47 = vld [vmem:[#allocation41_spill] sm:$0xff]  ;;  %v2891_v59 = vld [vmem:[#allocation28_spill] sm:$0xff] }
 0x38f   :  { %1232 = vmatpush.msrb.mxu0 %v2319_v41  ;;  %1252 = vmatpush.msrb.mxu1 %v2322_v33  ;;  %v2892_v41 = vld [vmem:[#allocation29_spill] sm:$0xff]  ;;  %v2893_v33 = vld [vmem:[#allocation30_spill] sm:$0xff] }
 0x390   :  { %1272 = vmatpush.msrb.mxu2 %v2325_v34  ;;  %1292 = vmatpush.msrb.mxu3 %v2328_v36  ;;  %v2894_v34 = vld [vmem:[#allocation42_spill] sm:$0xff]  ;;  %v2895_v36 = vld [vmem:[#allocation31_spill] sm:$0xff] }
 0x391   :  { %1233 = vmatpush.msrb.mxu0 %v2331_v37  ;;  %1253 = vmatpush.msrb.mxu1 %v2334_v51  ;;  %v2896_v37 = vld [vmem:[#allocation33_spill] sm:$0xff]  ;;  %v2897_v51 = vld [vmem:[#allocation34_spill] sm:$0xff] }
 0x392   :  { %1273 = vmatpush.msrb.mxu2 %v2337_v52  ;;  %1293 = vmatpush.msrb.mxu3 %v2340_v55  ;;  %v2898_v52 = vld [vmem:[#allocation43_spill] sm:$0xff] }
 0x393   :  { %1234 = vmatpush.msrb.mxu0 %v2343_v49  ;;  %1254 = vmatpush.msrb.mxu1 %v2346_v48  ;;  %v2899_v55 = vld [vmem:[#allocation35_spill] sm:$0xff]  ;;  %v2900_v49 = vld [vmem:[#allocation37_spill] sm:$0xff]  ;;  %v2901_v48 = vld [vmem:[#allocation38_spill] sm:$0xff] }
 0x394   :  { %1274 = vmatpush.msrb.mxu2 %v2349_v54  ;;  %1294 = vmatpush.msrb.mxu3 %v2352_v60  ;;  %v2902_v54 = vld [vmem:[#allocation44_spill] sm:$0xff]  ;;  %v918_v60 = vld [vmem:[#allocation4 + $0xa0] sm:$0xff] }
 0x395   :  { %1235 = vmatpush.msrb.mxu0 %v2355_v44  ;;  %1255 = vmatpush.msrb.mxu1 %v2358_v50  ;;  %v919_v44 = vld [vmem:[#allocation4 + $0xa8] sm:$0xff] }
 0x396   :  { %1275 = vmatpush.msrb.mxu2 %v2361_v63  ;;  %1295 = vmatpush.msrb.mxu3 %v2364_v57 }
 0x397   :  { %1236 = vmatpush.msrb.mxu0 %v2367_v62  ;;  %1256 = vmatpush.msrb.mxu1 %v2370_v46 }
 0x398   :  { %1276 = vmatpush.msrb.mxu2 %v2373_v0  ;;  %1296 = vmatpush.msrb.mxu3 %v2376_v40  ;;  %v921_v40 = vld [vmem:[#allocation4 + $0xb8] sm:$0xff] }
 0x399   :  { %1237 = vmatpush.msrb.mxu0 %v2379_v56  ;;  %1257 = vmatpush.msrb.mxu1 %v2876_v23 }
 0x39a   :  { %1277 = vmatpush.msrb.mxu2 %v2877_v24  ;;  %1297 = vmatpush.msrb.mxu3 %v2878_v25 }
 0x39b   :  { %1238 = vmatpush.msrb.mxu0 %v2879_v26  ;;  %1258 = vmatpush.msrb.mxu1 %v2880_v42 }
 0x39c   :  { %1278 = vmatpush.msrb.mxu2 %v2881_v27  ;;  %1298 = vmatpush.msrb.mxu3 %v2882_v28 }
 0x39d   :  { %1239 = vmatpush.msrb.mxu0 %v2883_v29  ;;  %1259 = vmatpush.msrb.mxu1 %v2884_v30 }
 0x39e   :  { %1279 = vmatpush.msrb.mxu2 %v2885_v31  ;;  %1299 = vmatpush.msrb.mxu3 %v2886_v32 }
 0x39f   :  { %1240 = vmatpush.msrb.mxu0 %v2887_v35  ;;  %1260 = vmatpush.msrb.mxu1 %v2888_v39 }
 0x3a0   :  { %1280 = vmatpush.msrb.mxu2 %v2889_v43  ;;  %1300 = vmatpush.msrb.mxu3 %v2890_v47 }
 0x3a1   :  { %1241 = vmatpush.msrb.mxu0 %v2891_v59  ;;  %1261 = vmatpush.msrb.mxu1 %v2892_v41 }
 0x3a2   :  { %1281 = vmatpush.msrb.mxu2 %v2893_v33  ;;  %1301 = vmatpush.msrb.mxu3 %v2894_v34 }
 0x3a3   :  { %1242 = vmatpush.msrb.mxu0 %v2895_v36  ;;  %1262 = vmatpush.msrb.mxu1 %v2896_v37 }
 0x3a4   :  { %1282 = vmatpush.msrb.mxu2 %v2897_v51  ;;  %1302 = vmatpush.msrb.mxu3 %v2898_v52  ;;  %v1071_v52 = vld [vmem:[#allocation4 + $0xc0] sm:$0xff] }
 0x3a5   :  { %1243 = vmatpush.msrb.mxu0 %v2899_v55  ;;  %1263 = vmatpush.msrb.mxu1 %v2900_v49  ;;  %v1072_v55 = vld [vmem:[#allocation4 + $0xc8] sm:$0xff] }
 0x3a6   :  { %1283 = vmatpush.msrb.mxu2 %v2901_v48  ;;  %1303 = vmatpush.msrb.mxu3 %v2902_v54 }
 0x402   :  { %v939_v50 = vpop.f32.mrf.mxu0  ;;  %v959_v63 = vpop.f32.mrf.mxu1 }
 0x403   :  { %v1002_v57 = vadd.f32 %v939_v50, %v918_v60  ;;  %v1003_v62 = vadd.f32 %v959_v63, %v919_v44  ;;  %v1074_v63 = vld [vmem:[#allocation4 + $0xd8] sm:$0xff] }
 0x405   :  { %v1419_v46 = vmul.f32 -1.442695, %v1002_v57  ;;  %v1420_v0 = vmul.f32 -1.442695, %v1003_v62 }
 0x407   :  { %1516 = vpow2.f32 %v1419_v46 }
 0x408   :  { %1518 = vpow2.f32 %v1420_v0 }
 0x409   :  { %v999_v56 = vpop.f32.mrf.mxu3  ;;  %v979_v17 = vpop.f32.mrf.mxu2 }
 0x40a   :  { %v1005_v14 = vadd.f32 %v999_v56, %v921_v40  ;;  %v1004_v11 = vadd.f32 %v979_v17, %v920_v13 }
 0x40c   :  { %v1421_v61 = vmul.f32 -1.442695, %v1005_v14  ;;  %v1073_v14 = vld [vmem:[#allocation4 + $0xd0] sm:$0xff] }
 0x40d   :  { %v1517_v38 = vpop.eup %1516 }
 0x40e   :  { %v1519_v45 = vpop.eup %1518  ;;  %v1009_v53 = vadd.f32 1.0, %v1517_v38  ;;  %1520 = vpow2.f32 %v1421_v61 }
 0x40f   :  { %v1028_v2 = vadd.f32 1.0, %v1519_v45 }
 0x410   :  { %1522 = vrcp.f32 %v1009_v53  ;;  %v1021_v20 = vand.u32 2147483648, %v1009_v53  ;;  %v1019_v7 = vand.u32 2147483647, %v1009_v53  ;;  %vm1015_vm14 = vweird.f32 %v1009_v53 }
 0x411   :  { %1524 = vrcp.f32 %v1028_v2  ;;  %v1040_v18 = vand.u32 2147483648, %v1028_v2  ;;  %v1038_v5 = vand.u32 2147483647, %v1028_v2  ;;  %vm1034_vm15 = vweird.f32 %v1028_v2 }
 0x412   :  { %v1022_v23 = vor.u32 1.1754944e-38, %v1021_v20  ;;  %vm1020_vm2 = vcmp.eq.f32.partialorder %v1019_v7, 8.507059e+37 }
 0x413   :  { %v1041_v26 = vor.u32 1.1754944e-38, %v1040_v18  ;;  %vm1039_vm3 = vcmp.eq.f32.partialorder %v1038_v5, 8.507059e+37 }
 0x414   :  { %v1521_v15 = vpop.eup %1520 }
 0x415   :  { %v1048_v22 = vadd.f32 1.0, %v1521_v15 }
 0x416   :  { %v1523_v10 = vpop.eup %1522 }
 0x417   :  { %v1525_v9 = vpop.eup %1524  ;;  %v1011_v19 = vmul.f32 %v1523_v10, %v1009_v53  ;;  %1526 = vrcp.f32 %v1048_v22  ;;  %vm1016_vm12 = vweird.f32 %v1523_v10  ;;  %v1060_v59 = vand.u32 2147483648, %v1048_v22 }
 0x418   :  { %v1030_v1 = vmul.f32 %v1525_v9, %v1028_v2  ;;  %1528 = vtanh.f32 %v1004_v11  ;;  %vm1035_vm13 = vweird.f32 %v1525_v9  ;;  %vm1017_vm0 = vmor %vm1015_vm14, %vm1016_vm12  ;;  %vm1054_vm5 = vweird.f32 %v1048_v22 }
 0x419   :  { %v1012_v16 = vsub.f32 1.0, %v1011_v19  ;;  %vm1036_vm1 = vmor %vm1034_vm15, %vm1035_vm13  ;;  %v1058_v41 = vand.u32 2147483647, %v1048_v22  ;;  %v1061_v34 = vor.u32 1.1754944e-38, %v1060_v59 }
 0x41a   :  { %v1031_v4 = vsub.f32 1.0, %v1030_v1 }
 0x41b   :  { %v1013_v58 = vmul.f32 %v1523_v10, %v1012_v16  ;;  %vm1059_vm7 = vcmp.eq.f32.partialorder %v1058_v41, 8.507059e+37 }
 0x41c   :  { %v1032_v21 = vmul.f32 %v1525_v9, %v1031_v4 }
 0x41d   :  { %v1527_v12 = vpop.eup %1526  ;;  %v1014_v8 = vadd.f32 %v1523_v10, %v1013_v58 }
 0x41e   :  { %v1033_v24 = vadd.f32 %v1525_v9, %v1032_v21  ;;  %v1050_v25 = vmul.f32 %v1527_v12, %v1048_v22  ;;  %v1529_v27 = vpop.eup %1528  ;;  %vm1055_vm4 = vweird.f32 %v1527_v12 }
 0x41f   :  { %v1018_v42 = vsel %vm1017_vm0, %v1523_v10, %v1014_v8  ;;  %vm1056_vm6 = vmor %vm1054_vm5, %vm1055_vm4 }
 0x420   :  { %v1023_v28 = vsel %vm1020_vm2, %v1022_v23, %v1018_v42  ;;  %v1037_v29 = vsel %vm1036_vm1, %v1525_v9, %v1033_v24  ;;  %v1051_v30 = vsub.f32 1.0, %v1050_v25 }
 0x421   :  { %v1042_v31 = vsel %vm1039_vm3, %v1041_v26, %v1037_v29  ;;  %v1065_v32 = vmul.f32 %v1529_v27, %v1023_v28 }
 0x422   :  { %v1064_v35 = vmul.f32 %v1042_v31, %v2535_v3  ;;  %v1052_v39 = vmul.f32 %v1527_v12, %v1051_v30 }
 0x424   :  { %v2606_v43 = vadd.f32 %v1065_v32, %v1064_v35  ;;  %v1053_v47 = vadd.f32 %v1527_v12, %v1052_v39 }
 0x426   :  { %1530 = vtanh.f32 %v2606_v43  ;;  %v1057_v33 = vsel %vm1056_vm6, %v1527_v12, %v1053_v47 }
 0x427   :  { %v1062_v37 = vsel %vm1059_vm7, %v1061_v34, %v1057_v33  ;;  %v1224_v33 = vld [vmem:[#allocation4 + $0xe0] sm:$0xff]  ;;  %v1225_v34 = vld [vmem:[#allocation4 + $0xe8] sm:$0xff] }
 0x42c   :  { %v1531_v36 = vpop.eup %1530 }
 0x42d   :  { %v1068_v51 = vmul.f32 %v1531_v36, %v1062_v37 }
 0x42f   :  { %1091 = vmatmul.f32.vlgmr.msra.gmra.mxu0 %v1068_v51  ;;  %1111 = vmatmul.f32.vlgmr.msra.gmra.mxu1 %v1068_v51  ;;  %v2610_v3 = vadd.f32 %v1068_v51, %v2539_v6 }
 0x430   :  { %1131 = vmatmul.f32.vlgmr.msra.gmra.mxu2 %v1068_v51  ;;  %1151 = vmatmul.f32.vlgmr.msra.gmra.mxu3 %v1068_v51 }
 0x4ac   :  { %v1092_v49 = vpop.f32.mrf.mxu0  ;;  %v1112_v48 = vpop.f32.mrf.mxu1 }
 0x4ad   :  { %v1155_v54 = vadd.f32 %v1092_v49, %v1071_v52  ;;  %v1156_v60 = vadd.f32 %v1112_v48, %v1072_v55  ;;  %v1227_v48 = vld [vmem:[#allocation4 + $0xf8] sm:$0xff] }
 0x4af   :  { %v1422_v44 = vmul.f32 -1.442695, %v1155_v54  ;;  %v1423_v50 = vmul.f32 -1.442695, %v1156_v60 }
 0x4b1   :  { %1532 = vpow2.f32 %v1422_v44 }
 0x4b2   :  { %1534 = vpow2.f32 %v1423_v50 }
 0x4b3   :  { %v1152_v57 = vpop.f32.mrf.mxu3  ;;  %v1132_v61 = vpop.f32.mrf.mxu2 }
 0x4b4   :  { %v1158_v62 = vadd.f32 %v1152_v57, %v1074_v63  ;;  %v1157_v2 = vadd.f32 %v1132_v61, %v1073_v14 }
 0x4b6   :  { %v1424_v46 = vmul.f32 -1.442695, %v1158_v62  ;;  %v1226_v62 = vld [vmem:[#allocation4 + $0xf0] sm:$0xff] }
 0x4b7   :  { %v1533_v0 = vpop.eup %1532 }
 0x4b8   :  { %v1535_v40 = vpop.eup %1534  ;;  %v1162_v6 = vadd.f32 1.0, %v1533_v0  ;;  %1536 = vpow2.f32 %v1424_v46 }
 0x4b9   :  { %v1181_v56 = vadd.f32 1.0, %v1535_v40 }
 0x4ba   :  { %1538 = vrcp.f32 %v1162_v6  ;;  %v1174_v11 = vand.u32 2147483648, %v1162_v6  ;;  %v1172_v1 = vand.u32 2147483647, %v1162_v6  ;;  %vm1168_vm10 = vweird.f32 %v1162_v6 }
 0x4bb   :  { %1540 = vrcp.f32 %v1181_v56  ;;  %v1193_v9 = vand.u32 2147483648, %v1181_v56  ;;  %v1191_v4 = vand.u32 2147483647, %v1181_v56  ;;  %vm1187_vm11 = vweird.f32 %v1181_v56 }
 0x4bc   :  { %v1175_v58 = vor.u32 1.1754944e-38, %v1174_v11  ;;  %vm1173_vm14 = vcmp.eq.f32.partialorder %v1172_v1, 8.507059e+37 }
 0x4bd   :  { %v1194_v5 = vor.u32 1.1754944e-38, %v1193_v9  ;;  %vm1192_vm15 = vcmp.eq.f32.partialorder %v1191_v4, 8.507059e+37 }
 0x4be   :  { %v1537_v38 = vpop.eup %1536 }
 0x4bf   :  { %v1201_v45 = vadd.f32 1.0, %v1537_v38 }
 0x4c0   :  { %v1539_v53 = vpop.eup %1538 }
 0x4c1   :  { %v1541_v13 = vpop.eup %1540  ;;  %v1164_v17 = vmul.f32 %v1539_v53, %v1162_v6  ;;  %1542 = vrcp.f32 %v1201_v45  ;;  %vm1169_vm8 = vweird.f32 %v1539_v53  ;;  %v1213_v31 = vand.u32 2147483648, %v1201_v45 }
 0x4c2   :  { %v1183_v15 = vmul.f32 %v1541_v13, %v1181_v56  ;;  %1544 = vtanh.f32 %v1157_v2  ;;  %vm1188_vm9 = vweird.f32 %v1541_v13  ;;  %vm1170_vm12 = vmor %vm1168_vm10, %vm1169_vm8  ;;  %vm1207_vm1 = vweird.f32 %v1201_v45 }
 0x4c3   :  { %v1165_v22 = vsub.f32 1.0, %v1164_v17  ;;  %vm1189_vm13 = vmor %vm1187_vm11, %vm1188_vm9  ;;  %v1211_v32 = vand.u32 2147483647, %v1201_v45  ;;  %v1214_v39 = vor.u32 1.1754944e-38, %v1213_v31 }
 0x4c4   :  { %v1184_v10 = vsub.f32 1.0, %v1183_v15 }
 0x4c5   :  { %v1166_v19 = vmul.f32 %v1539_v53, %v1165_v22  ;;  %vm1212_vm3 = vcmp.eq.f32.partialorder %v1211_v32, 8.507059e+37 }
 0x4c6   :  { %v1185_v16 = vmul.f32 %v1541_v13, %v1184_v10 }
 0x4c7   :  { %v1543_v20 = vpop.eup %1542  ;;  %v1167_v18 = vadd.f32 %v1539_v53, %v1166_v19 }
 0x4c8   :  { %v1186_v7 = vadd.f32 %v1541_v13, %v1185_v16  ;;  %v1203_v21 = vmul.f32 %v1543_v20, %v1201_v45  ;;  %v1545_v8 = vpop.eup %1544  ;;  %vm1208_vm0 = vweird.f32 %v1543_v20 }
 0x4c9   :  { %v1171_v12 = vsel %vm1170_vm12, %v1539_v53, %v1167_v18  ;;  %vm1209_vm2 = vmor %vm1207_vm1, %vm1208_vm0 }
 0x4ca   :  { %v1176_v23 = vsel %vm1173_vm14, %v1175_v58, %v1171_v12  ;;  %v1190_v24 = vsel %vm1189_vm13, %v1541_v13, %v1186_v7  ;;  %v1204_v25 = vsub.f32 1.0, %v1203_v21 }
 0x4cb   :  { %v1195_v26 = vsel %vm1192_vm15, %v1194_v5, %v1190_v24  ;;  %v1218_v42 = vmul.f32 %v1545_v8, %v1176_v23 }
 0x4cc   :  { %v1217_v27 = vmul.f32 %v1195_v26, %v2606_v43  ;;  %v1205_v28 = vmul.f32 %v1543_v20, %v1204_v25 }
 0x4ce   :  { %v2613_v29 = vadd.f32 %v1218_v42, %v1217_v27  ;;  %v1206_v30 = vadd.f32 %v1543_v20, %v1205_v28 }
 0x4d0   :  { %1546 = vtanh.f32 %v2613_v29  ;;  %v1210_v35 = vsel %vm1209_vm2, %v1543_v20, %v1206_v30 }
 0x4d1   :  { %v1215_v59 = vsel %vm1212_vm3, %v1214_v39, %v1210_v35 }
 0x4d6   :  { %v1547_v47 = vpop.eup %1546 }
 0x4d7   :  { %v1221_v41 = vmul.f32 %v1547_v47, %v1215_v59 }
 0x4d9   :  { %1244 = vmatmul.f32.vlgmr.msrb.gmra.mxu0 %v1221_v41  ;;  %1264 = vmatmul.f32.vlgmr.msrb.gmra.mxu1 %v1221_v41  ;;  %v2617_v43 = vadd.f32 %v1221_v41, %v2610_v3 }
 0x4da   :  { %1284 = vmatmul.f32.vlgmr.msrb.gmra.mxu2 %v1221_v41  ;;  %1304 = vmatmul.f32.vlgmr.msrb.gmra.mxu3 %v1221_v41 }
 0x556   :  { %v1245_v36 = vpop.f32.mrf.mxu0  ;;  %v1265_v37 = vpop.f32.mrf.mxu1 }
 0x557   :  { %v1308_v51 = vadd.f32 %v1245_v36, %v1224_v33  ;;  %v1309_v52 = vadd.f32 %v1265_v37, %v1225_v34 }
 0x559   :  { %v1425_v55 = vmul.f32 -1.442695, %v1308_v51  ;;  %v1426_v49 = vmul.f32 -1.442695, %v1309_v52 }
 0x55b   :  { %1548 = vpow2.f32 %v1425_v55 }
 0x55c   :  { %1550 = vpow2.f32 %v1426_v49 }
 0x55d   :  { %v1305_v54 = vpop.f32.mrf.mxu3  ;;  %v1285_v46 = vpop.f32.mrf.mxu2 }
 0x55e   :  { %v1311_v60 = vadd.f32 %v1305_v54, %v1227_v48  ;;  %v1310_v56 = vadd.f32 %v1285_v46, %v1226_v62 }
 0x560   :  { %v1427_v44 = vmul.f32 -1.442695, %v1311_v60 }
 0x561   :  { %v1549_v50 = vpop.eup %1548 }
 0x562   :  { %v1551_v63 = vpop.eup %1550  ;;  %v1315_v3 = vadd.f32 1.0, %v1549_v50  ;;  %1552 = vpow2.f32 %v1427_v44 }
 0x563   :  { %v1334_v57 = vadd.f32 1.0, %v1551_v63 }
 0x564   :  { %1554 = vrcp.f32 %v1315_v3  ;;  %v1327_v2 = vand.u32 2147483648, %v1315_v3  ;;  %v1325_v15 = vand.u32 2147483647, %v1315_v3  ;;  %vm1321_vm6 = vweird.f32 %v1315_v3 }
 0x565   :  { %1556 = vrcp.f32 %v1334_v57  ;;  %v1346_v13 = vand.u32 2147483648, %v1334_v57  ;;  %v1344_v10 = vand.u32 2147483647, %v1334_v57  ;;  %vm1340_vm7 = vweird.f32 %v1334_v57 }
 0x566   :  { %v1328_v19 = vor.u32 1.1754944e-38, %v1327_v2  ;;  %vm1326_vm10 = vcmp.eq.f32.partialorder %v1325_v15, 8.507059e+37 }
 0x567   :  { %v1347_v4 = vor.u32 1.1754944e-38, %v1346_v13  ;;  %vm1345_vm11 = vcmp.eq.f32.partialorder %v1344_v10, 8.507059e+37 }
 0x568   :  { %v1553_v0 = vpop.eup %1552 }
 0x569   :  { %v1354_v40 = vadd.f32 1.0, %v1553_v0 }
 0x56a   :  { %v1555_v6 = vpop.eup %1554 }
 0x56b   :  { %v1557_v14 = vpop.eup %1556  ;;  %v1317_v61 = vmul.f32 %v1555_v6, %v1315_v3  ;;  %1558 = vrcp.f32 %v1354_v40  ;;  %vm1322_vm4 = vweird.f32 %v1555_v6  ;;  %v1366_v26 = vand.u32 2147483648, %v1354_v40 }
 0x56c   :  { %v1336_v38 = vmul.f32 %v1557_v14, %v1334_v57  ;;  %1560 = vtanh.f32 %v1310_v56  ;;  %vm1341_vm5 = vweird.f32 %v1557_v14  ;;  %vm1323_vm8 = vmor %vm1321_vm6, %vm1322_vm4  ;;  %vm1360_vm13 = vweird.f32 %v1354_v40 }
 0x56d   :  { %v1318_v45 = vsub.f32 1.0, %v1317_v61  ;;  %vm1342_vm9 = vmor %vm1340_vm7, %vm1341_vm5  ;;  %v1364_v42 = vand.u32 2147483647, %v1354_v40  ;;  %v1367_v28 = vor.u32 1.1754944e-38, %v1366_v26 }
 0x56e   :  { %v1337_v53 = vsub.f32 1.0, %v1336_v38 }
 0x56f   :  { %v1319_v17 = vmul.f32 %v1555_v6, %v1318_v45  ;;  %vm1365_vm15 = vcmp.eq.f32.partialorder %v1364_v42, 8.507059e+37 }
 0x570   :  { %v1338_v22 = vmul.f32 %v1557_v14, %v1337_v53 }
 0x571   :  { %v1559_v11 = vpop.eup %1558  ;;  %v1320_v9 = vadd.f32 %v1555_v6, %v1319_v17 }
 0x572   :  { %v1339_v1 = vadd.f32 %v1557_v14, %v1338_v22  ;;  %v1356_v16 = vmul.f32 %v1559_v11, %v1354_v40  ;;  %v1561_v18 = vpop.eup %1560  ;;  %vm1361_vm12 = vweird.f32 %v1559_v11 }
 0x573   :  { %v1324_v20 = vsel %vm1323_vm8, %v1555_v6, %v1320_v9  ;;  %vm1362_vm14 = vmor %vm1360_vm13, %vm1361_vm12 }
 0x574   :  { %v1329_v58 = vsel %vm1326_vm10, %v1328_v19, %v1324_v20  ;;  %v1343_v7 = vsel %vm1342_vm9, %v1557_v14, %v1339_v1  ;;  %v1357_v21 = vsub.f32 1.0, %v1356_v16 }
 0x575   :  { %v1348_v5 = vsel %vm1345_vm11, %v1347_v4, %v1343_v7  ;;  %v1371_v12 = vmul.f32 %v1561_v18, %v1329_v58 }
 0x576   :  { %v1370_v8 = vmul.f32 %v1348_v5, %v2613_v29  ;;  %v1358_v23 = vmul.f32 %v1559_v11, %v1357_v21 }
 0x578   :  { %v1372_v24 = vadd.f32 %v1371_v12, %v1370_v8  ;;  %v1359_v25 = vadd.f32 %v1559_v11, %v1358_v23 }
 0x57a   :  { %1562 = vtanh.f32 %v1372_v24  ;;  %v1363_v27 = vsel %vm1362_vm14, %v1559_v11, %v1359_v25 }
 0x57b   :  { %v1368_v31 = vsel %vm1365_vm15, %v1367_v28, %v1363_v27 }
 0x580   :  { %v1563_v30 = vpop.eup %1562 }
 0x581   :  { %v1374_v32 = vmul.f32 %v1563_v30, %v1368_v31 }
 0x583   :  { %v1375_v29 = vadd.f32 %v1374_v32, %v2617_v43 }
 0x585   :  { %v1383_v35 = vmul.f32 0.125, %v1375_v29 }
 0x587   :  { %1384 = vst [vmem:[#allocation12] sm:$0xff] %v1383_v35 }
 0x588   :  { %1395 = dma.vmem_to_hbm [thread:$0]  %s1391_s3, 128, %s1393_s11, [#allocation6]  }
 0x589   :  { %1754 = dma.done.wait [#allocation6], 128  }
 0x58a   :  { %1755 = vsyncadd [#allocation6], 4294967168 }
 0x58b   :  { %1400 = vsyncpa [#allocation5], 1 }
 0x58c   :  { %1401 = vsyncpa [#allocation8], 1 }
 0x58d   :  { %1402 = vsyncpa [#allocation11], 1 }
 0x58e   :  { %1403 = vsyncpa [#allocation6], 1 }

</bundles_post_ra>
